<compile_context>
chip_gen: v7x
topology: tpu7x:2x2x1
jax: 0.10.0
libtpu: 0.0.40
codegen_flags: <defaults>
</compile_context>

<pallas_src>
import functools

import jax
import jax.numpy as jnp
from jax.experimental import pallas as pl
from jax.experimental.pallas import tpu as pltpu


# Set to False to reproduce torch's exact-erf GELU in f32; the tanh approximation
# routes the transcendental to the EUP (separate VLIW slot).
GELU_APPROX = True

# Use the single-matmul im2col path when the contraction channel count is a
# multiple of the bf16 sublane pack (keeps the concat a cheap aligned stack).
_IM2COL_ALIGN = 16


# ----------------------------- hardware-aware knobs --------------------------

@functools.lru_cache(maxsize=1)
def _vmem_capacity_bytes():
    try:
        return int(pltpu.get_tpu_info().vmem_capacity_bytes)
    except Exception:
        return 64 * 1024 * 1024          # conservative (v7x per-TC VMEM)


def _vmem_limit_bytes():
    # ~75% of physical VMEM, capped: 96 MiB on 128 MiB parts, 48 MiB on v7x.
    return min(int(_vmem_capacity_bytes() * 3 // 4), 100 * 1024 * 1024)


def _choose_l_tile(L):
    """Single full-length tile for short sequences, else a 128-multiple tile."""
    target = 2048 if _vmem_capacity_bytes() >= (100 << 20) else 1024
    if L <= target:
        return L
    return target                         # multiple of 128 -> lane-dense tiles


def _tiling(L, Lt):
    n_lt = -(-L // Lt)                    # ceil
    return n_lt, n_lt * Lt                # (num L tiles, rounded-up stored length)


# ------------------------------ kernel helpers --------------------------------

def _conv_taps(xg, w_ref, b_ref, *, K, d, Lout, im2col):
    """One dilated 'same' conv over a pre-activated bf16 window.

    xg    : (Cin, Lout + extra)  bf16 window; tap k reads xg[:, k*d : k*d + Lout]
    w_ref : (Co, K*Cin) bf16 (im2col) or (K, Co, Cin) bf16 (per-tap fallback)
    b_ref : (Co, 1) f32
    returns (Co, Lout) f32
    """
    if im2col:
        if K == 1:
            a = xg[:, :Lout]
        else:
            # Stack the K shifted taps along the sublane axis -> one deep matmul.
            a = jnp.concatenate([xg[:, k * d:k * d + Lout] for k in range(K)],
                                axis=0)
        return jnp.dot(w_ref[...], a, preferred_element_type=jnp.float32) + b_ref[...]
    # Fallback for small / unaligned channel counts: per-tap matmuls on a single
    # pre-cast bf16 window (no per-tap casts).
    Co = w_ref.shape[1]
    acc = jnp.broadcast_to(b_ref[...], (Co, Lout)).astype(jnp.float32)
    for k in range(K):                    # K is small & static
        acc = acc + jnp.dot(w_ref[k], xg[:, k * d:k * d + Lout],
                            preferred_element_type=jnp.float32)
    return acc


# --------------------------------- fused kernel --------------------------------

def _conv_block_kernel(x_ref, w1_ref, b1_ref, w2_ref, b2_ref, *rest,
                       K, dilation, pad, Lt, L_valid, has_proj, single_tile,
                       im2col1, im2col2, mask_tail):
    """Fused ConvBlock: out = conv2(GELU(conv1(GELU(x)))) + residual.

    x_ref : (1, Cin, Lp) zero-padded raw input row (2*pad halo each side).
    rest  : [wp_ref (Co, Cin) bf16, bp_ref (Co, 1) f32]  (if has_proj)
            + [out_ref (1, Co, Lt) f32]
    """
    if has_proj:
        wp_ref, bp_ref, out_ref = rest
    else:
        (out_ref,) = rest

    Lw = Lt + 4 * pad                     # x window needed by conv1 o conv2
    Lh = Lt + 2 * pad                     # extended h center needed by conv2

    if single_tile:
        xw = x_ref[0]                                          # (Cin, Lw) static
    else:
        # Lt is a multiple of 128 whenever we tile -> aligned dynamic lane offset.
        start = pl.multiple_of(pl.program_id(1) * Lt, 128)
        xw = x_ref[0, :, pl.ds(start, Lw)]

    # Residual path: projector sees the PRE-GELU center slice (positions of this
    # output tile).  Identity residual stays in f32 vregs.
    xc = xw[:, 2 * pad:2 * pad + Lt]
    if has_proj:
        res = jnp.dot(wp_ref[...], xc.astype(jnp.bfloat16),
                      preferred_element_type=jnp.float32) + bp_ref[...]
    else:
        res = xc.astype(jnp.float32)

    # GELU(0) == 0, so GELU-after-zero-pad == zero-pad-after-GELU.  Single bf16
    # cast of the whole window; taps slice the pre-cast array.
    xg = jax.nn.gelu(xw, approximate=GELU_APPROX).astype(jnp.bfloat16)

    # conv1 over the extended center [tile_start - pad, tile_start + Lt + pad).
    h = _conv_taps(xg, w1_ref, b1_ref, K=K, d=dilation, Lout=Lh, im2col=im2col1)

    # conv2 expects zero-padded h: zero positions outside [0, L).  Only the edge
    # tiles actually change; cost is one select over (Co, Lh).
    pos_h = (pl.program_id(1) * Lt - pad
             + jax.lax.broadcasted_iota(jnp.int32, h.shape, 1))
    h = jnp.where((pos_h >= 0) & (pos_h < L_valid), h, 0.0)

    hg = jax.nn.gelu(h, approximate=GELU_APPROX).astype(jnp.bfloat16)

    out = _conv_taps(hg, w2_ref, b2_ref, K=K, d=dilation, Lout=Lt, im2col=im2col2)
    out = out + res

    out_ref[0] = out.astype(out_ref.dtype)

    if mask_tail:
        # Only when L was rounded up: the last tile re-stores with a zero tail so
        # the next block (and the final slice) sees zeros past the true length.
        @pl.when(pl.program_id(1) == pl.num_programs(1) - 1)
        def _():
            pos = (pl.program_id(1) * Lt
                   + jax.lax.broadcasted_iota(jnp.int32, out.shape, 1))
            out_ref[0] = jnp.where(pos < L_valid, out, 0.0).astype(out_ref.dtype)


# --------------------------------- wrappers ------------------------------------

def _prep_w_im2col(w):
    """(Co, Cin, K) -> (Co, K*Cin) bf16 matching [tap0; tap1; ...] operand order."""
    Co, Cin, K = w.shape
    return jnp.transpose(w, (0, 2, 1)).reshape(Co, K * Cin).astype(jnp.bfloat16)


def _prep_w_taps(w):
    """(Co, Cin, K) -> (K, Co, Cin) bf16: per-tap access is a cheap leading index."""
    return jnp.transpose(w, (2, 0, 1)).astype(jnp.bfloat16)


def conv_block_forward(x, blk, *, L, Lt):
    """One fused ConvBlock.  x: (B, Cin, Lx) with Lx in {L, L_round}; any tail
    beyond L must already be zero.  Returns (B, Co, L_round) f32 with zero tail."""
    w1, b1 = blk["conv1"]
    w2, b2 = blk["conv2"]
    proj = blk["proj"]
    d = blk["dilation"]

    B, Cin, Lx = x.shape
    Co, _, K = w1.shape
    rf = (K - 1) * d + 1
    pad = rf // 2
    n_lt, L_round = _tiling(L, Lt)
    assert Lx in (L, L_round)
    Lp = L_round + 4 * pad

    # Single zero-pad per block: 2*pad halo each side (+ alignment tail).
    # TODO(synk): remove this remaining pad by carrying a halo-padded activation
    # layout between blocks (aliased pre-zeroed buffer / Element-offset out blocks).
    x_pad = jnp.pad(x, ((0, 0), (0, 0), (2 * pad, Lp - 2 * pad - Lx)))

    im2col1 = (Cin % _IM2COL_ALIGN == 0)
    im2col2 = (Co % _IM2COL_ALIGN == 0)

    inputs = [x_pad]
    # Whole padded row per batch element; halo windows are sliced in-kernel.
    # TODO(synk): for very long sequences (Cin*Lp beyond VMEM, esp. v7x 64 MiB/TC)
    # L-tile this block with a manual halo DMA (pl.ANY + make_async_copy) and
    # single-buffer it (pl.Buffered(1)).
    in_specs = [pl.BlockSpec((1, Cin, Lp), lambda b, j: (b, 0, 0))]

    def add_conv(w, b, im2col):
        co, ci, k = w.shape
        if im2col:
            inputs.append(_prep_w_im2col(w))
            in_specs.append(pl.BlockSpec((co, k * ci), lambda b, j: (0, 0)))
        else:
            inputs.append(_prep_w_taps(w))
            in_specs.append(pl.BlockSpec((k, co, ci), lambda b, j: (0, 0, 0)))
        inputs.append(b.reshape(co, 1).astype(jnp.float32))
        in_specs.append(pl.BlockSpec((co, 1), lambda b, j: (0, 0)))

    add_conv(w1, b1, im2col1)
    add_conv(w2, b2, im2col2)

    has_proj = proj is not None
    if has_proj:
        wp, bp = proj
        inputs.append(wp.reshape(Co, Cin).astype(jnp.bfloat16))
        in_specs.append(pl.BlockSpec((Co, Cin), lambda b, j: (0, 0)))
        inputs.append(bp.reshape(Co, 1).astype(jnp.float32))
        in_specs.append(pl.BlockSpec((Co, 1), lambda b, j: (0, 0)))
    else:
        assert Cin == Co, "identity residual requires Cin == Co"

    kernel = functools.partial(
        _conv_block_kernel, K=K, dilation=d, pad=pad, Lt=Lt, L_valid=L,
        has_proj=has_proj, single_tile=(n_lt == 1),
        im2col1=im2col1, im2col2=im2col2, mask_tail=(L_round > L))

    # Batch axis parallel (megacore); L-tile axis arbitrary so both v7x cores
    # don't each DMA the same full row.  Fall back to L-parallel when B == 1.
    dims = ("parallel", "arbitrary") if B > 1 else ("arbitrary", "parallel")

    return pl.pallas_call(
        kernel,
        out_shape=jax.ShapeDtypeStruct((B, Co, L_round), jnp.float32),
        grid=(B, n_lt),
        in_specs=in_specs,
        out_specs=pl.BlockSpec((1, Co, Lt), lambda b, j: (b, 0, j)),
        compiler_params=pltpu.CompilerParams(
            dimension_semantics=dims,
            vmem_limit_bytes=_vmem_limit_bytes()),
    )(*inputs)


# ----------------------------- parameter setup ---------------------------------

def _init_conv_params(key, out_ch, in_ch, k):
    """Deterministic Conv1d-style init: U(-1/sqrt(fan_in), 1/sqrt(fan_in))."""
    kw, kb = jax.random.split(key)
    bound = 1.0 / jnp.sqrt(in_ch * k)
    w = jax.random.uniform(kw, (out_ch, in_ch, k), jnp.float32, -bound, bound)
    b = jax.random.uniform(kb, (out_ch,), jnp.float32, -bound, bound)
    return w, b


def init_dilatedconv_params(key, in_channels, channels, kernel_size):
    assert len(channels) == len(kernel_size)
    params = []
    for i in range(len(channels)):
        c_in = channels[i - 1] if i > 0 else in_channels
        c_out = channels[i]
        ks = kernel_size[i]
        final = (i == len(channels) - 1)
        key, k1, k2, k3 = jax.random.split(key, 4)
        conv1 = _init_conv_params(k1, c_out, c_in, ks)
        conv2 = _init_conv_params(k2, c_out, c_out, ks)
        proj = (_init_conv_params(k3, c_out, c_in, 1)
                if (c_in != c_out or final) else None)
        params.append(dict(conv1=conv1, conv2=conv2, proj=proj, dilation=2 ** i))
    return params


# ------------------------------- forward pass -----------------------------------

def dilatedconv_forward(x, params):
    B, C, L = x.shape
    Lt = _choose_l_tile(L)
    for blk in params:
        x = conv_block_forward(x, blk, L=L, Lt=Lt)   # (B, Co, L_round), zero tail
    return x[:, :, :L]                               # drop alignment tail


# --------------------------- pure-JAX reference (check) -------------------------

def _same_pad_conv_ref(x, w, b, dilation):
    K = w.shape[2]
    rf = (K - 1) * dilation + 1
    pad = rf // 2
    out = jax.lax.conv_general_dilated(
        x, w, window_strides=(1,), padding=[(pad, pad)],
        rhs_dilation=(dilation,), dimension_numbers=("NCH", "OIH", "NCH"))
    out = out + b[None, :, None]
    if rf % 2 == 0:
        out = out[:, :, :-1]
    return out


def dilatedconv_reference(x, params):
    for blk in params:
        w1, b1 = blk["conv1"]
        w2, b2 = blk["conv2"]
        d = blk["dilation"]
        if blk["proj"] is None:
            res = x
        else:
            wp, bp = blk["proj"]
            res = _same_pad_conv_ref(x, wp, bp, 1)
        h = _same_pad_conv_ref(jax.nn.gelu(x, approximate=GELU_APPROX), w1, b1, d)
        y = _same_pad_conv_ref(jax.nn.gelu(h, approximate=GELU_APPROX), w2, b2, d)
        x = y + res
    return x


# ----------------------------------- main ----------------------------------------

if __name__ == "__main__":
    key = jax.random.PRNGKey(0)
    k_in, k_par = jax.random.split(key)

    # Small deterministic example: exercises projector, identity-residual,
    # im2col and per-tap paths, dilations 1 / 2 / 4.
    B, C_IN, L = 2, 4, 16
    channels = [16, 16, 32]
    kernel_size = [3, 3, 3]

    x = jax.random.normal(k_in, (B, C_IN, L), jnp.float32)
    params = init_dilatedconv_params(k_par, C_IN, channels, kernel_size)

    fwd = jax.jit(lambda inp: dilatedconv_forward(inp, params))
    out = jax.block_until_ready(fwd(x))

    assert out.shape == (B, channels[-1], L), out.shape
    assert bool(jnp.all(jnp.isfinite(out)))

    # Correctness check against a pure-JAX reference (bf16 MXU operands with f32
    # accumulation -> moderate tolerance).
    ref = jax.block_until_ready(jax.jit(lambda inp: dilatedconv_reference(inp, params))(x))
    err = float(jnp.max(jnp.abs(out - ref)))
    scale = float(jnp.max(jnp.abs(ref)))
    assert err <= 0.05 * scale + 0.02, f"max abs err {err} (scale {scale})"

    print("KERNEL_OK")
</pallas_src>

<mosaic_0001>
module attributes {stable_mosaic.version = 11 : i64} {
  func.func @_conv_block_kernel(%arg0: i32, %arg1: i32, %arg2: memref<1x16x24xf32, #tpu.memory_space<vmem>>, %arg3: memref<16x48xbf16, #tpu.memory_space<vmem>>, %arg4: memref<16x1xf32, #tpu.memory_space<vmem>>, %arg5: memref<16x48xbf16, #tpu.memory_space<vmem>>, %arg6: memref<16x1xf32, #tpu.memory_space<vmem>>, %arg7: memref<1x16x16xf32, #tpu.memory_space<vmem>>) attributes {dimension_semantics = [#tpu.dimension_semantics<parallel>, #tpu.dimension_semantics<arbitrary>], iteration_bounds = array<i64: 2, 1>, scalar_prefetch = 0 : i64, scratch_operands = 0 : i64, tpu.core_type = #tpu.core_type<tc>, window_params = [{transform_indices = @transform_0, window_bounds = array<i64: 1, 16, 24>}, {pipeline_mode = #tpu.pipeline_mode<synchronous>, transform_indices = @transform_1, window_bounds = array<i64: 16, 48>}, {pipeline_mode = #tpu.pipeline_mode<synchronous>, transform_indices = @transform_2, window_bounds = array<i64: 16, 1>}, {pipeline_mode = #tpu.pipeline_mode<synchronous>, transform_indices = @transform_3, window_bounds = array<i64: 16, 48>}, {pipeline_mode = #tpu.pipeline_mode<synchronous>, transform_indices = @transform_4, window_bounds = array<i64: 16, 1>}, {transform_indices = @transform_5, window_bounds = array<i64: 1, 16, 16>}]} {
    %c0 = arith.constant 0 : index
    %c0_0 = arith.constant 0 : index
    %c0_1 = arith.constant 0 : index
    %0 = vector.load %arg2[%c0, %c0_0, %c0_1] : memref<1x16x24xf32, #tpu.memory_space<vmem>>, vector<1x16x24xf32>
    %1 = vector.shape_cast %0 : vector<1x16x24xf32> to vector<16x24xf32>
    %2 = vector.extract_strided_slice %1 {offsets = [0, 4], sizes = [16, 16], strides = [1, 1]} : vector<16x24xf32> to vector<16x16xf32>
    %3 = arith.mulf %1, %1 : vector<16x24xf32>
    %4 = arith.mulf %1, %3 : vector<16x24xf32>
    %cst = arith.constant 4.471500e-02 : f32
    %5 = vector.broadcast %cst : f32 to vector<16x24xf32>
    %6 = arith.mulf %5, %4 : vector<16x24xf32>
    %7 = arith.addf %1, %6 : vector<16x24xf32>
    %cst_2 = arith.constant 0.797884583 : f32
    %8 = vector.broadcast %cst_2 : f32 to vector<16x24xf32>
    %9 = arith.mulf %8, %7 : vector<16x24xf32>
    %10 = math.tanh %9 : vector<16x24xf32>
    %cst_3 = arith.constant 1.000000e+00 : f32
    %11 = vector.broadcast %cst_3 : f32 to vector<16x24xf32>
    %12 = arith.addf %11, %10 : vector<16x24xf32>
    %cst_4 = arith.constant 5.000000e-01 : f32
    %13 = vector.broadcast %cst_4 : f32 to vector<16x24xf32>
    %14 = arith.mulf %13, %12 : vector<16x24xf32>
    %15 = arith.mulf %1, %14 : vector<16x24xf32>
    %16 = arith.truncf %15 : vector<16x24xf32> to vector<16x24xbf16>
    %17 = vector.extract_strided_slice %16 {offsets = [0, 0], sizes = [16, 20], strides = [1, 1]} : vector<16x24xbf16> to vector<16x20xbf16>
    %18 = vector.extract_strided_slice %16 {offsets = [0, 2], sizes = [16, 20], strides = [1, 1]} : vector<16x24xbf16> to vector<16x20xbf16>
    %19 = vector.extract_strided_slice %16 {offsets = [0, 4], sizes = [16, 20], strides = [1, 1]} : vector<16x24xbf16> to vector<16x20xbf16>
    %20 = tpu.concatenate %17, %18, %19 in 0 : vector<16x20xbf16>, vector<16x20xbf16>, vector<16x20xbf16> -> vector<48x20xbf16>
    %c0_5 = arith.constant 0 : index
    %c0_6 = arith.constant 0 : index
    %21 = vector.load %arg3[%c0_5, %c0_6] : memref<16x48xbf16, #tpu.memory_space<vmem>>, vector<16x48xbf16>
    %cst_7 = arith.constant dense<0.000000e+00> : vector<16x20xf32>
    %22 = tpu.matmul %21, %20, %cst_7 {dimension_numbers = #tpu.dot_dimension_numbers<[1], [0], [0], [1], [0, 0, 1, 1], [], []>} : vector<16x48xbf16>, vector<48x20xbf16>, vector<16x20xf32> -> vector<16x20xf32>
    %c0_8 = arith.constant 0 : index
    %c0_9 = arith.constant 0 : index
    %23 = vector.load %arg4[%c0_8, %c0_9] : memref<16x1xf32, #tpu.memory_space<vmem>>, vector<16x1xf32>
    %24 = vector.broadcast %23 : vector<16x1xf32> to vector<16x20xf32>
    %25 = arith.addf %22, %24 : vector<16x20xf32>
    %c16_i32 = arith.constant 16 : i32
    %26 = arith.muli %arg1, %c16_i32 : i32
    %c2_i32 = arith.constant 2 : i32
    %27 = arith.subi %26, %c2_i32 : i32
    %28 = tpu.iota {dimensions = array<i32: 1>} : vector<16x20xi32>
    %29 = vector.broadcast %27 : i32 to vector<16x20xi32>
    %30 = arith.addi %29, %28 : vector<16x20xi32>
    %c0_i32 = arith.constant 0 : i32
    %31 = vector.broadcast %c0_i32 : i32 to vector<16x20xi32>
    %32 = arith.cmpi sge, %30, %31 : vector<16x20xi32>
    %c16_i32_10 = arith.constant 16 : i32
    %33 = vector.broadcast %c16_i32_10 : i32 to vector<16x20xi32>
    %34 = arith.cmpi slt, %30, %33 : vector<16x20xi32>
    %35 = arith.andi %32, %34 : vector<16x20xi1>
    %cst_11 = arith.constant 0.000000e+00 : f32
    %36 = vector.broadcast %cst_11 : f32 to vector<16x20xf32>
    %37 = arith.select %35, %25, %36 : vector<16x20xi1>, vector<16x20xf32>
    %38 = arith.mulf %37, %37 : vector<16x20xf32>
    %39 = arith.mulf %37, %38 : vector<16x20xf32>
    %cst_12 = arith.constant 4.471500e-02 : f32
    %40 = vector.broadcast %cst_12 : f32 to vector<16x20xf32>
    %41 = arith.mulf %40, %39 : vector<16x20xf32>
    %42 = arith.addf %37, %41 : vector<16x20xf32>
    %cst_13 = arith.constant 0.797884583 : f32
    %43 = vector.broadcast %cst_13 : f32 to vector<16x20xf32>
    %44 = arith.mulf %43, %42 : vector<16x20xf32>
    %45 = math.tanh %44 : vector<16x20xf32>
    %cst_14 = arith.constant 1.000000e+00 : f32
    %46 = vector.broadcast %cst_14 : f32 to vector<16x20xf32>
    %47 = arith.addf %46, %45 : vector<16x20xf32>
    %cst_15 = arith.constant 5.000000e-01 : f32
    %48 = vector.broadcast %cst_15 : f32 to vector<16x20xf32>
    %49 = arith.mulf %48, %47 : vector<16x20xf32>
    %50 = arith.mulf %37, %49 : vector<16x20xf32>
    %51 = arith.truncf %50 : vector<16x20xf32> to vector<16x20xbf16>
    %52 = vector.extract_strided_slice %51 {offsets = [0, 0], sizes = [16, 16], strides = [1, 1]} : vector<16x20xbf16> to vector<16x16xbf16>
    %53 = vector.extract_strided_slice %51 {offsets = [0, 2], sizes = [16, 16], strides = [1, 1]} : vector<16x20xbf16> to vector<16x16xbf16>
    %54 = vector.extract_strided_slice %51 {offsets = [0, 4], sizes = [16, 16], strides = [1, 1]} : vector<16x20xbf16> to vector<16x16xbf16>
    %55 = tpu.concatenate %52, %53, %54 in 0 : vector<16x16xbf16>, vector<16x16xbf16>, vector<16x16xbf16> -> vector<48x16xbf16>
    %c0_16 = arith.constant 0 : index
    %c0_17 = arith.constant 0 : index
    %56 = vector.load %arg5[%c0_16, %c0_17] : memref<16x48xbf16, #tpu.memory_space<vmem>>, vector<16x48xbf16>
    %cst_18 = arith.constant dense<0.000000e+00> : vector<16x16xf32>
    %57 = tpu.matmul %56, %55, %cst_18 {dimension_numbers = #tpu.dot_dimension_numbers<[1], [0], [0], [1], [0, 0, 1, 1], [], []>} : vector<16x48xbf16>, vector<48x16xbf16>, vector<16x16xf32> -> vector<16x16xf32>
    %c0_19 = arith.constant 0 : index
    %c0_20 = arith.constant 0 : index
    %58 = vector.load %arg6[%c0_19, %c0_20] : memref<16x1xf32, #tpu.memory_space<vmem>>, vector<16x1xf32>
    %59 = vector.broadcast %58 : vector<16x1xf32> to vector<16x16xf32>
    %60 = arith.addf %57, %59 : vector<16x16xf32>
    %61 = arith.addf %60, %2 : vector<16x16xf32>
    %c0_21 = arith.constant 0 : index
    %c0_22 = arith.constant 0 : index
    %c0_23 = arith.constant 0 : index
    %62 = vector.load %arg7[%c0_21, %c0_22, %c0_23] : memref<1x16x16xf32, #tpu.memory_space<vmem>>, vector<1x16x16xf32>
    %63 = vector.shape_cast %62 : vector<1x16x16xf32> to vector<16x16xf32>
    %64 = vector.shape_cast %61 : vector<16x16xf32> to vector<1x16x16xf32>
    tpu.vector_store %arg7[%c0_21, %c0_22, %c0_23], %64 {strides = array<i32>} : memref<1x16x16xf32, #tpu.memory_space<vmem>>, vector<1x16x16xf32>,
    return
  }
  func.func @transform_0(%arg0: i32, %arg1: i32) -> (i32, i32, i32) {
    %c0_i32 = arith.constant 0 : i32
    %c0_i32_0 = arith.constant 0 : i32
    %c0_i32_1 = arith.constant 0 : i32
    return %arg0, %c0_i32, %c0_i32_0 : i32, i32, i32
  }
  func.func @transform_1(%arg0: i32, %arg1: i32) -> (i32, i32) {
    %c0_i32 = arith.constant 0 : i32
    %c0_i32_0 = arith.constant 0 : i32
    %c0_i32_1 = arith.constant 0 : i32
    return %c0_i32, %c0_i32_0 : i32, i32
  }
  func.func @transform_2(%arg0: i32, %arg1: i32) -> (i32, i32) {
    %c0_i32 = arith.constant 0 : i32
    %c0_i32_0 = arith.constant 0 : i32
    %c0_i32_1 = arith.constant 0 : i32
    return %c0_i32, %c0_i32_0 : i32, i32
  }
  func.func @transform_3(%arg0: i32, %arg1: i32) -> (i32, i32) {
    %c0_i32 = arith.constant 0 : i32
    %c0_i32_0 = arith.constant 0 : i32
    %c0_i32_1 = arith.constant 0 : i32
    return %c0_i32, %c0_i32_0 : i32, i32
  }
  func.func @transform_4(%arg0: i32, %arg1: i32) -> (i32, i32) {
    %c0_i32 = arith.constant 0 : i32
    %c0_i32_0 = arith.constant 0 : i32
    %c0_i32_1 = arith.constant 0 : i32
    return %c0_i32, %c0_i32_0 : i32, i32
  }
  func.func @transform_5(%arg0: i32, %arg1: i32) -> (i32, i32, i32) {
    %c0_i32 = arith.constant 0 : i32
    %c0_i32_0 = arith.constant 0 : i32
    return %arg0, %c0_i32, %arg1 : i32, i32, i32
  }
}

module attributes {stable_mosaic.version = 11 : i64} {
  func.func @_conv_block_kernel(%arg0: i32, %arg1: i32, %arg2: memref<1x4x20xf32, #tpu.memory_space<vmem>>, %arg3: memref<3x16x4xbf16, #tpu.memory_space<vmem>>, %arg4: memref<16x1xf32, #tpu.memory_space<vmem>>, %arg5: memref<16x48xbf16, #tpu.memory_space<vmem>>, %arg6: memref<16x1xf32, #tpu.memory_space<vmem>>, %arg7: memref<16x4xbf16, #tpu.memory_space<vmem>>, %arg8: memref<16x1xf32, #tpu.memory_space<vmem>>, %arg9: memref<1x16x16xf32, #tpu.memory_space<vmem>>) attributes {dimension_semantics = [#tpu.dimension_semantics<parallel>, #tpu.dimension_semantics<arbitrary>], iteration_bounds = array<i64: 2, 1>, scalar_prefetch = 0 : i64, scratch_operands = 0 : i64, tpu.core_type = #tpu.core_type<tc>, window_params = [{transform_indices = @transform_0, window_bounds = array<i64: 1, 4, 20>}, {pipeline_mode = #tpu.pipeline_mode<synchronous>, transform_indices = @transform_1, window_bounds = array<i64: 3, 16, 4>}, {pipeline_mode = #tpu.pipeline_mode<synchronous>, transform_indices = @transform_2, window_bounds = array<i64: 16, 1>}, {pipeline_mode = #tpu.pipeline_mode<synchronous>, transform_indices = @transform_3, window_bounds = array<i64: 16, 48>}, {pipeline_mode = #tpu.pipeline_mode<synchronous>, transform_indices = @transform_4, window_bounds = array<i64: 16, 1>}, {pipeline_mode = #tpu.pipeline_mode<synchronous>, transform_indices = @transform_5, window_bounds = array<i64: 16, 4>}, {pipeline_mode = #tpu.pipeline_mode<synchronous>, transform_indices = @transform_6, window_bounds = array<i64: 16, 1>}, {transform_indices = @transform_7, window_bounds = array<i64: 1, 16, 16>}]} {
    %c0 = arith.constant 0 : index
    %c0_0 = arith.constant 0 : index
    %c0_1 = arith.constant 0 : index
    %0 = vector.load %arg2[%c0, %c0_0, %c0_1] : memref<1x4x20xf32, #tpu.memory_space<vmem>>, vector<1x4x20xf32>
    %1 = vector.shape_cast %0 : vector<1x4x20xf32> to vector<4x20xf32>
    %2 = vector.extract_strided_slice %1 {offsets = [0, 2], sizes = [4, 16], strides = [1, 1]} : vector<4x20xf32> to vector<4x16xf32>
    %c0_2 = arith.constant 0 : index
    %c0_3 = arith.constant 0 : index
    %3 = vector.load %arg7[%c0_2, %c0_3] : memref<16x4xbf16, #tpu.memory_space<vmem>>, vector<16x4xbf16>
    %4 = arith.truncf %2 : vector<4x16xf32> to vector<4x16xbf16>
    %cst = arith.constant dense<0.000000e+00> : vector<16x16xf32>
    %5 = tpu.matmul %3, %4, %cst {dimension_numbers = #tpu.dot_dimension_numbers<[1], [0], [0], [1], [0, 0, 1, 1], [], []>} : vector<16x4xbf16>, vector<4x16xbf16>, vector<16x16xf32> -> vector<16x16xf32>
    %c0_4 = arith.constant 0 : index
    %c0_5 = arith.constant 0 : index
    %6 = vector.load %arg8[%c0_4, %c0_5] : memref<16x1xf32, #tpu.memory_space<vmem>>, vector<16x1xf32>
    %7 = vector.broadcast %6 : vector<16x1xf32> to vector<16x16xf32>
    %8 = arith.addf %5, %7 : vector<16x16xf32>
    %9 = arith.mulf %1, %1 : vector<4x20xf32>
    %10 = arith.mulf %1, %9 : vector<4x20xf32>
    %cst_6 = arith.constant 4.471500e-02 : f32
    %11 = vector.broadcast %cst_6 : f32 to vector<4x20xf32>
    %12 = arith.mulf %11, %10 : vector<4x20xf32>
    %13 = arith.addf %1, %12 : vector<4x20xf32>
    %cst_7 = arith.constant 0.797884583 : f32
    %14 = vector.broadcast %cst_7 : f32 to vector<4x20xf32>
    %15 = arith.mulf %14, %13 : vector<4x20xf32>
    %16 = math.tanh %15 : vector<4x20xf32>
    %cst_8 = arith.constant 1.000000e+00 : f32
    %17 = vector.broadcast %cst_8 : f32 to vector<4x20xf32>
    %18 = arith.addf %17, %16 : vector<4x20xf32>
    %cst_9 = arith.constant 5.000000e-01 : f32
    %19 = vector.broadcast %cst_9 : f32 to vector<4x20xf32>
    %20 = arith.mulf %19, %18 : vector<4x20xf32>
    %21 = arith.mulf %1, %20 : vector<4x20xf32>
    %22 = arith.truncf %21 : vector<4x20xf32> to vector<4x20xbf16>
    %c0_10 = arith.constant 0 : index
    %c0_11 = arith.constant 0 : index
    %23 = vector.load %arg4[%c0_10, %c0_11] : memref<16x1xf32, #tpu.memory_space<vmem>>, vector<16x1xf32>
    %24 = vector.shape_cast %23 : vector<16x1xf32> to vector<16x1xf32>
    %25 = vector.broadcast %24 : vector<16x1xf32> to vector<16x18xf32>
    %c0_12 = arith.constant 0 : index
    %c0_13 = arith.constant 0 : index
    %c0_14 = arith.constant 0 : index
    %26 = vector.load %arg3[%c0_12, %c0_13, %c0_14] : memref<3x16x4xbf16, #tpu.memory_space<vmem>>, vector<1x16x4xbf16>
    %27 = vector.shape_cast %26 : vector<1x16x4xbf16> to vector<16x4xbf16>
    %28 = vector.extract_strided_slice %22 {offsets = [0, 0], sizes = [4, 18], strides = [1, 1]} : vector<4x20xbf16> to vector<4x18xbf16>
    %cst_15 = arith.constant dense<0.000000e+00> : vector<16x18xf32>
    %29 = tpu.matmul %27, %28, %cst_15 {dimension_numbers = #tpu.dot_dimension_numbers<[1], [0], [0], [1], [0, 0, 1, 1], [], []>} : vector<16x4xbf16>, vector<4x18xbf16>, vector<16x18xf32> -> vector<16x18xf32>
    %30 = arith.addf %25, %29 : vector<16x18xf32>
    %c1 = arith.constant 1 : index
    %c0_16 = arith.constant 0 : index
    %c0_17 = arith.constant 0 : index
    %31 = vector.load %arg3[%c1, %c0_16, %c0_17] : memref<3x16x4xbf16, #tpu.memory_space<vmem>>, vector<1x16x4xbf16>
    %32 = vector.shape_cast %31 : vector<1x16x4xbf16> to vector<16x4xbf16>
    %33 = vector.extract_strided_slice %22 {offsets = [0, 1], sizes = [4, 18], strides = [1, 1]} : vector<4x20xbf16> to vector<4x18xbf16>
    %cst_18 = arith.constant dense<0.000000e+00> : vector<16x18xf32>
    %34 = tpu.matmul %32, %33, %cst_18 {dimension_numbers = #tpu.dot_dimension_numbers<[1], [0], [0], [1], [0, 0, 1, 1], [], []>} : vector<16x4xbf16>, vector<4x18xbf16>, vector<16x18xf32> -> vector<16x18xf32>
    %35 = arith.addf %30, %34 : vector<16x18xf32>
    %c2 = arith.constant 2 : index
    %c0_19 = arith.constant 0 : index
    %c0_20 = arith.constant 0 : index
    %36 = vector.load %arg3[%c2, %c0_19, %c0_20] : memref<3x16x4xbf16, #tpu.memory_space<vmem>>, vector<1x16x4xbf16>
    %37 = vector.shape_cast %36 : vector<1x16x4xbf16> to vector<16x4xbf16>
    %38 = vector.extract_strided_slice %22 {offsets = [0, 2], sizes = [4, 18], strides = [1, 1]} : vector<4x20xbf16> to vector<4x18xbf16>
    %cst_21 = arith.constant dense<0.000000e+00> : vector<16x18xf32>
    %39 = tpu.matmul %37, %38, %cst_21 {dimension_numbers = #tpu.dot_dimension_numbers<[1], [0], [0], [1], [0, 0, 1, 1], [], []>} : vector<16x4xbf16>, vector<4x18xbf16>, vector<16x18xf32> -> vector<16x18xf32>
    %40 = arith.addf %35, %39 : vector<16x18xf32>
    %c16_i32 = arith.constant 16 : i32
    %41 = arith.muli %arg1, %c16_i32 : i32
    %c1_i32 = arith.constant 1 : i32
    %42 = arith.subi %41, %c1_i32 : i32
    %43 = tpu.iota {dimensions = array<i32: 1>} : vector<16x18xi32>
    %44 = vector.broadcast %42 : i32 to vector<16x18xi32>
    %45 = arith.addi %44, %43 : vector<16x18xi32>
    %c0_i32 = arith.constant 0 : i32
    %46 = vector.broadcast %c0_i32 : i32 to vector<16x18xi32>
    %47 = arith.cmpi sge, %45, %46 : vector<16x18xi32>
    %c16_i32_22 = arith.constant 16 : i32
    %48 = vector.broadcast %c16_i32_22 : i32 to vector<16x18xi32>
    %49 = arith.cmpi slt, %45, %48 : vector<16x18xi32>
    %50 = arith.andi %47, %49 : vector<16x18xi1>
    %cst_23 = arith.constant 0.000000e+00 : f32
    %51 = vector.broadcast %cst_23 : f32 to vector<16x18xf32>
    %52 = arith.select %50, %40, %51 : vector<16x18xi1>, vector<16x18xf32>
    %53 = arith.mulf %52, %52 : vector<16x18xf32>
    %54 = arith.mulf %52, %53 : vector<16x18xf32>
    %cst_24 = arith.constant 4.471500e-02 : f32
    %55 = vector.broadcast %cst_24 : f32 to vector<16x18xf32>
    %56 = arith.mulf %55, %54 : vector<16x18xf32>
    %57 = arith.addf %52, %56 : vector<16x18xf32>
    %cst_25 = arith.constant 0.797884583 : f32
    %58 = vector.broadcast %cst_25 : f32 to vector<16x18xf32>
    %59 = arith.mulf %58, %57 : vector<16x18xf32>
    %60 = math.tanh %59 : vector<16x18xf32>
    %cst_26 = arith.constant 1.000000e+00 : f32
    %61 = vector.broadcast %cst_26 : f32 to vector<16x18xf32>
    %62 = arith.addf %61, %60 : vector<16x18xf32>
    %cst_27 = arith.constant 5.000000e-01 : f32
    %63 = vector.broadcast %cst_27 : f32 to vector<16x18xf32>
    %64 = arith.mulf %63, %62 : vector<16x18xf32>
    %65 = arith.mulf %52, %64 : vector<16x18xf32>
    %66 = arith.truncf %65 : vector<16x18xf32> to vector<16x18xbf16>
    %67 = vector.extract_strided_slice %66 {offsets = [0, 0], sizes = [16, 16], strides = [1, 1]} : vector<16x18xbf16> to vector<16x16xbf16>
    %68 = vector.extract_strided_slice %66 {offsets = [0, 1], sizes = [16, 16], strides = [1, 1]} : vector<16x18xbf16> to vector<16x16xbf16>
    %69 = vector.extract_strided_slice %66 {offsets = [0, 2], sizes = [16, 16], strides = [1, 1]} : vector<16x18xbf16> to vector<16x16xbf16>
    %70 = tpu.concatenate %67, %68, %69 in 0 : vector<16x16xbf16>, vector<16x16xbf16>, vector<16x16xbf16> -> vector<48x16xbf16>
    %c0_28 = arith.constant 0 : index
    %c0_29 = arith.constant 0 : index
    %71 = vector.load %arg5[%c0_28, %c0_29] : memref<16x48xbf16, #tpu.memory_space<vmem>>, vector<16x48xbf16>
    %cst_30 = arith.constant dense<0.000000e+00> : vector<16x16xf32>
    %72 = tpu.matmul %71, %70, %cst_30 {dimension_numbers = #tpu.dot_dimension_numbers<[1], [0], [0], [1], [0, 0, 1, 1], [], []>} : vector<16x48xbf16>, vector<48x16xbf16>, vector<16x16xf32> -> vector<16x16xf32>
    %c0_31 = arith.constant 0 : index
    %c0_32 = arith.constant 0 : index
    %73 = vector.load %arg6[%c0_31, %c0_32] : memref<16x1xf32, #tpu.memory_space<vmem>>, vector<16x1xf32>
    %74 = vector.broadcast %73 : vector<16x1xf32> to vector<16x16xf32>
    %75 = arith.addf %72, %74 : vector<16x16xf32>
    %76 = arith.addf %75, %8 : vector<16x16xf32>
    %c0_33 = arith.constant 0 : index
    %c0_34 = arith.constant 0 : index
    %c0_35 = arith.constant 0 : index
    %77 = vector.load %arg9[%c0_33, %c0_34, %c0_35] : memref<1x16x16xf32, #tpu.memory_space<vmem>>, vector<1x16x16xf32>
    %78 = vector.shape_cast %77 : vector<1x16x16xf32> to vector<16x16xf32>
    %79 = vector.shape_cast %76 : vector<16x16xf32> to vector<1x16x16xf32>
    tpu.vector_store %arg9[%c0_33, %c0_34, %c0_35], %79 {strides = array<i32>} : memref<1x16x16xf32, #tpu.memory_space<vmem>>, vector<1x16x16xf32>,
    return
  }
  func.func @transform_0(%arg0: i32, %arg1: i32) -> (i32, i32, i32) {
    %c0_i32 = arith.constant 0 : i32
    %c0_i32_0 = arith.constant 0 : i32
    %c0_i32_1 = arith.constant 0 : i32
    return %arg0, %c0_i32, %c0_i32_0 : i32, i32, i32
  }
  func.func @transform_1(%arg0: i32, %arg1: i32) -> (i32, i32, i32) {
    %c0_i32 = arith.constant 0 : i32
    %c0_i32_0 = arith.constant 0 : i32
    %c0_i32_1 = arith.constant 0 : i32
    %c0_i32_2 = arith.constant 0 : i32
    return %c0_i32, %c0_i32_0, %c0_i32_1 : i32, i32, i32
  }
  func.func @transform_2(%arg0: i32, %arg1: i32) -> (i32, i32) {
    %c0_i32 = arith.constant 0 : i32
    %c0_i32_0 = arith.constant 0 : i32
    %c0_i32_1 = arith.constant 0 : i32
    return %c0_i32, %c0_i32_0 : i32, i32
  }
  func.func @transform_3(%arg0: i32, %arg1: i32) -> (i32, i32) {
    %c0_i32 = arith.constant 0 : i32
    %c0_i32_0 = arith.constant 0 : i32
    %c0_i32_1 = arith.constant 0 : i32
    return %c0_i32, %c0_i32_0 : i32, i32
  }
  func.func @transform_4(%arg0: i32, %arg1: i32) -> (i32, i32) {
    %c0_i32 = arith.constant 0 : i32
    %c0_i32_0 = arith.constant 0 : i32
    %c0_i32_1 = arith.constant 0 : i32
    return %c0_i32, %c0_i32_0 : i32, i32
  }
  func.func @transform_5(%arg0: i32, %arg1: i32) -> (i32, i32) {
    %c0_i32 = arith.constant 0 : i32
    %c0_i32_0 = arith.constant 0 : i32
    %c0_i32_1 = arith.constant 0 : i32
    return %c0_i32, %c0_i32_0 : i32, i32
  }
  func.func @transform_6(%arg0: i32, %arg1: i32) -> (i32, i32) {
    %c0_i32 = arith.constant 0 : i32
    %c0_i32_0 = arith.constant 0 : i32
    %c0_i32_1 = arith.constant 0 : i32
    return %c0_i32, %c0_i32_0 : i32, i32
  }
  func.func @transform_7(%arg0: i32, %arg1: i32) -> (i32, i32, i32) {
    %c0_i32 = arith.constant 0 : i32
    %c0_i32_0 = arith.constant 0 : i32
    return %arg0, %c0_i32, %arg1 : i32, i32, i32
  }
}

module attributes {stable_mosaic.version = 11 : i64} {
  func.func @_conv_block_kernel(%arg0: i32, %arg1: i32, %arg2: memref<1x16x32xf32, #tpu.memory_space<vmem>>, %arg3: memref<32x48xbf16, #tpu.memory_space<vmem>>, %arg4: memref<32x1xf32, #tpu.memory_space<vmem>>, %arg5: memref<32x96xbf16, #tpu.memory_space<vmem>>, %arg6: memref<32x1xf32, #tpu.memory_space<vmem>>, %arg7: memref<32x16xbf16, #tpu.memory_space<vmem>>, %arg8: memref<32x1xf32, #tpu.memory_space<vmem>>, %arg9: memref<1x32x16xf32, #tpu.memory_space<vmem>>) attributes {dimension_semantics = [#tpu.dimension_semantics<parallel>, #tpu.dimension_semantics<arbitrary>], iteration_bounds = array<i64: 2, 1>, scalar_prefetch = 0 : i64, scratch_operands = 0 : i64, tpu.core_type = #tpu.core_type<tc>, window_params = [{transform_indices = @transform_0, window_bounds = array<i64: 1, 16, 32>}, {pipeline_mode = #tpu.pipeline_mode<synchronous>, transform_indices = @transform_1, window_bounds = array<i64: 32, 48>}, {pipeline_mode = #tpu.pipeline_mode<synchronous>, transform_indices = @transform_2, window_bounds = array<i64: 32, 1>}, {pipeline_mode = #tpu.pipeline_mode<synchronous>, transform_indices = @transform_3, window_bounds = array<i64: 32, 96>}, {pipeline_mode = #tpu.pipeline_mode<synchronous>, transform_indices = @transform_4, window_bounds = array<i64: 32, 1>}, {pipeline_mode = #tpu.pipeline_mode<synchronous>, transform_indices = @transform_5, window_bounds = array<i64: 32, 16>}, {pipeline_mode = #tpu.pipeline_mode<synchronous>, transform_indices = @transform_6, window_bounds = array<i64: 32, 1>}, {transform_indices = @transform_7, window_bounds = array<i64: 1, 32, 16>}]} {
    %c0 = arith.constant 0 : index
    %c0_0 = arith.constant 0 : index
    %c0_1 = arith.constant 0 : index
    %0 = vector.load %arg2[%c0, %c0_0, %c0_1] : memref<1x16x32xf32, #tpu.memory_space<vmem>>, vector<1x16x32xf32>
    %1 = vector.shape_cast %0 : vector<1x16x32xf32> to vector<16x32xf32>
    %2 = vector.extract_strided_slice %1 {offsets = [0, 8], sizes = [16, 16], strides = [1, 1]} : vector<16x32xf32> to vector<16x16xf32>
    %c0_2 = arith.constant 0 : index
    %c0_3 = arith.constant 0 : index
    %3 = vector.load %arg7[%c0_2, %c0_3] : memref<32x16xbf16, #tpu.memory_space<vmem>>, vector<32x16xbf16>
    %4 = arith.truncf %2 : vector<16x16xf32> to vector<16x16xbf16>
    %cst = arith.constant dense<0.000000e+00> : vector<32x16xf32>
    %5 = tpu.matmul %3, %4, %cst {dimension_numbers = #tpu.dot_dimension_numbers<[1], [0], [0], [1], [0, 0, 1, 1], [], []>} : vector<32x16xbf16>, vector<16x16xbf16>, vector<32x16xf32> -> vector<32x16xf32>
    %c0_4 = arith.constant 0 : index
    %c0_5 = arith.constant 0 : index
    %6 = vector.load %arg8[%c0_4, %c0_5] : memref<32x1xf32, #tpu.memory_space<vmem>>, vector<32x1xf32>
    %7 = vector.broadcast %6 : vector<32x1xf32> to vector<32x16xf32>
    %8 = arith.addf %5, %7 : vector<32x16xf32>
    %9 = arith.mulf %1, %1 : vector<16x32xf32>
    %10 = arith.mulf %1, %9 : vector<16x32xf32>
    %cst_6 = arith.constant 4.471500e-02 : f32
    %11 = vector.broadcast %cst_6 : f32 to vector<16x32xf32>
    %12 = arith.mulf %11, %10 : vector<16x32xf32>
    %13 = arith.addf %1, %12 : vector<16x32xf32>
    %cst_7 = arith.constant 0.797884583 : f32
    %14 = vector.broadcast %cst_7 : f32 to vector<16x32xf32>
    %15 = arith.mulf %14, %13 : vector<16x32xf32>
    %16 = math.tanh %15 : vector<16x32xf32>
    %cst_8 = arith.constant 1.000000e+00 : f32
    %17 = vector.broadcast %cst_8 : f32 to vector<16x32xf32>
    %18 = arith.addf %17, %16 : vector<16x32xf32>
    %cst_9 = arith.constant 5.000000e-01 : f32
    %19 = vector.broadcast %cst_9 : f32 to vector<16x32xf32>
    %20 = arith.mulf %19, %18 : vector<16x32xf32>
    %21 = arith.mulf %1, %20 : vector<16x32xf32>
    %22 = arith.truncf %21 : vector<16x32xf32> to vector<16x32xbf16>
    %23 = vector.extract_strided_slice %22 {offsets = [0, 0], sizes = [16, 24], strides = [1, 1]} : vector<16x32xbf16> to vector<16x24xbf16>
    %24 = vector.extract_strided_slice %22 {offsets = [0, 4], sizes = [16, 24], strides = [1, 1]} : vector<16x32xbf16> to vector<16x24xbf16>
    %25 = vector.extract_strided_slice %22 {offsets = [0, 8], sizes = [16, 24], strides = [1, 1]} : vector<16x32xbf16> to vector<16x24xbf16>
    %26 = tpu.concatenate %23, %24, %25 in 0 : vector<16x24xbf16>, vector<16x24xbf16>, vector<16x24xbf16> -> vector<48x24xbf16>
    %c0_10 = arith.constant 0 : index
    %c0_11 = arith.constant 0 : index
    %27 = vector.load %arg3[%c0_10, %c0_11] : memref<32x48xbf16, #tpu.memory_space<vmem>>, vector<32x48xbf16>
    %cst_12 = arith.constant dense<0.000000e+00> : vector<32x24xf32>
    %28 = tpu.matmul %27, %26, %cst_12 {dimension_numbers = #tpu.dot_dimension_numbers<[1], [0], [0], [1], [0, 0, 1, 1], [], []>} : vector<32x48xbf16>, vector<48x24xbf16>, vector<32x24xf32> -> vector<32x24xf32>
    %c0_13 = arith.constant 0 : index
    %c0_14 = arith.constant 0 : index
    %29 = vector.load %arg4[%c0_13, %c0_14] : memref<32x1xf32, #tpu.memory_space<vmem>>, vector<32x1xf32>
    %30 = vector.broadcast %29 : vector<32x1xf32> to vector<32x24xf32>
    %31 = arith.addf %28, %30 : vector<32x24xf32>
    %c16_i32 = arith.constant 16 : i32
    %32 = arith.muli %arg1, %c16_i32 : i32
    %c4_i32 = arith.constant 4 : i32
    %33 = arith.subi %32, %c4_i32 : i32
    %34 = tpu.iota {dimensions = array<i32: 1>} : vector<32x24xi32>
    %35 = vector.broadcast %33 : i32 to vector<32x24xi32>
    %36 = arith.addi %35, %34 : vector<32x24xi32>
    %c0_i32 = arith.constant 0 : i32
    %37 = vector.broadcast %c0_i32 : i32 to vector<32x24xi32>
    %38 = arith.cmpi sge, %36, %37 : vector<32x24xi32>
    %c16_i32_15 = arith.constant 16 : i32
    %39 = vector.broadcast %c16_i32_15 : i32 to vector<32x24xi32>
    %40 = arith.cmpi slt, %36, %39 : vector<32x24xi32>
    %41 = arith.andi %38, %40 : vector<32x24xi1>
    %cst_16 = arith.constant 0.000000e+00 : f32
    %42 = vector.broadcast %cst_16 : f32 to vector<32x24xf32>
    %43 = arith.select %41, %31, %42 : vector<32x24xi1>, vector<32x24xf32>
    %44 = arith.mulf %43, %43 : vector<32x24xf32>
    %45 = arith.mulf %43, %44 : vector<32x24xf32>
    %cst_17 = arith.constant 4.471500e-02 : f32
    %46 = vector.broadcast %cst_17 : f32 to vector<32x24xf32>
    %47 = arith.mulf %46, %45 : vector<32x24xf32>
    %48 = arith.addf %43, %47 : vector<32x24xf32>
    %cst_18 = arith.constant 0.797884583 : f32
    %49 = vector.broadcast %cst_18 : f32 to vector<32x24xf32>
    %50 = arith.mulf %49, %48 : vector<32x24xf32>
    %51 = math.tanh %50 : vector<32x24xf32>
    %cst_19 = arith.constant 1.000000e+00 : f32
    %52 = vector.broadcast %cst_19 : f32 to vector<32x24xf32>
    %53 = arith.addf %52, %51 : vector<32x24xf32>
    %cst_20 = arith.constant 5.000000e-01 : f32
    %54 = vector.broadcast %cst_20 : f32 to vector<32x24xf32>
    %55 = arith.mulf %54, %53 : vector<32x24xf32>
    %56 = arith.mulf %43, %55 : vector<32x24xf32>
    %57 = arith.truncf %56 : vector<32x24xf32> to vector<32x24xbf16>
    %58 = vector.extract_strided_slice %57 {offsets = [0, 0], sizes = [32, 16], strides = [1, 1]} : vector<32x24xbf16> to vector<32x16xbf16>
    %59 = vector.extract_strided_slice %57 {offsets = [0, 4], sizes = [32, 16], strides = [1, 1]} : vector<32x24xbf16> to vector<32x16xbf16>
    %60 = vector.extract_strided_slice %57 {offsets = [0, 8], sizes = [32, 16], strides = [1, 1]} : vector<32x24xbf16> to vector<32x16xbf16>
    %61 = tpu.concatenate %58, %59, %60 in 0 : vector<32x16xbf16>, vector<32x16xbf16>, vector<32x16xbf16> -> vector<96x16xbf16>
    %c0_21 = arith.constant 0 : index
    %c0_22 = arith.constant 0 : index
    %62 = vector.load %arg5[%c0_21, %c0_22] : memref<32x96xbf16, #tpu.memory_space<vmem>>, vector<32x96xbf16>
    %cst_23 = arith.constant dense<0.000000e+00> : vector<32x16xf32>
    %63 = tpu.matmul %62, %61, %cst_23 {dimension_numbers = #tpu.dot_dimension_numbers<[1], [0], [0], [1], [0, 0, 1, 1], [], []>} : vector<32x96xbf16>, vector<96x16xbf16>, vector<32x16xf32> -> vector<32x16xf32>
    %c0_24 = arith.constant 0 : index
    %c0_25 = arith.constant 0 : index
    %64 = vector.load %arg6[%c0_24, %c0_25] : memref<32x1xf32, #tpu.memory_space<vmem>>, vector<32x1xf32>
    %65 = vector.broadcast %64 : vector<32x1xf32> to vector<32x16xf32>
    %66 = arith.addf %63, %65 : vector<32x16xf32>
    %67 = arith.addf %66, %8 : vector<32x16xf32>
    %c0_26 = arith.constant 0 : index
    %c0_27 = arith.constant 0 : index
    %c0_28 = arith.constant 0 : index
    %68 = vector.load %arg9[%c0_26, %c0_27, %c0_28] : memref<1x32x16xf32, #tpu.memory_space<vmem>>, vector<1x32x16xf32>
    %69 = vector.shape_cast %68 : vector<1x32x16xf32> to vector<32x16xf32>
    %70 = vector.shape_cast %67 : vector<32x16xf32> to vector<1x32x16xf32>
    tpu.vector_store %arg9[%c0_26, %c0_27, %c0_28], %70 {strides = array<i32>} : memref<1x32x16xf32, #tpu.memory_space<vmem>>, vector<1x32x16xf32>,
    return
  }
  func.func @transform_0(%arg0: i32, %arg1: i32) -> (i32, i32, i32) {
    %c0_i32 = arith.constant 0 : i32
    %c0_i32_0 = arith.constant 0 : i32
    %c0_i32_1 = arith.constant 0 : i32
    return %arg0, %c0_i32, %c0_i32_0 : i32, i32, i32
  }
  func.func @transform_1(%arg0: i32, %arg1: i32) -> (i32, i32) {
    %c0_i32 = arith.constant 0 : i32
    %c0_i32_0 = arith.constant 0 : i32
    %c0_i32_1 = arith.constant 0 : i32
    return %c0_i32, %c0_i32_0 : i32, i32
  }
  func.func @transform_2(%arg0: i32, %arg1: i32) -> (i32, i32) {
    %c0_i32 = arith.constant 0 : i32
    %c0_i32_0 = arith.constant 0 : i32
    %c0_i32_1 = arith.constant 0 : i32
    return %c0_i32, %c0_i32_0 : i32, i32
  }
  func.func @transform_3(%arg0: i32, %arg1: i32) -> (i32, i32) {
    %c0_i32 = arith.constant 0 : i32
    %c0_i32_0 = arith.constant 0 : i32
    %c0_i32_1 = arith.constant 0 : i32
    return %c0_i32, %c0_i32_0 : i32, i32
  }
  func.func @transform_4(%arg0: i32, %arg1: i32) -> (i32, i32) {
    %c0_i32 = arith.constant 0 : i32
    %c0_i32_0 = arith.constant 0 : i32
    %c0_i32_1 = arith.constant 0 : i32
    return %c0_i32, %c0_i32_0 : i32, i32
  }
  func.func @transform_5(%arg0: i32, %arg1: i32) -> (i32, i32) {
    %c0_i32 = arith.constant 0 : i32
    %c0_i32_0 = arith.constant 0 : i32
    %c0_i32_1 = arith.constant 0 : i32
    return %c0_i32, %c0_i32_0 : i32, i32
  }
  func.func @transform_6(%arg0: i32, %arg1: i32) -> (i32, i32) {
    %c0_i32 = arith.constant 0 : i32
    %c0_i32_0 = arith.constant 0 : i32
    %c0_i32_1 = arith.constant 0 : i32
    return %c0_i32, %c0_i32_0 : i32, i32
  }
  func.func @transform_7(%arg0: i32, %arg1: i32) -> (i32, i32, i32) {
    %c0_i32 = arith.constant 0 : i32
    %c0_i32_0 = arith.constant 0 : i32
    return %arg0, %c0_i32, %arg1 : i32, i32, i32
  }
}

</mosaic_0001>

<bundles_post_ra>
// kernel: _lambda_.3
= control target key start
LH: loop header
LB: loop body
LE: loop exit
PB: predicated region body
PF: predicated region fallthrough
CT: control target
= control target key end

     0   :  { %12 = vsyncpa [#allocation3], 0  ;;  %s1028_s24 = smov 0   ;;  %s1030_s25 = smov 0   ;;  %s1165_s0 = inlined_call_operand.vmem [shape: f32[2,4,20], index: 0, kind: input, shape index: {}]   ;;  %s1166_s1 = inlined_call_operand.vmem [shape: bf16[3,16,4], index: 1, kind: input, shape index: {}]   ;;  %s1167_s2 = inlined_call_operand.vmem [shape: f32[16,1], index: 2, kind: input, shape index: {}]   ;;  %s1168_s3 = inlined_call_operand.vmem [shape: bf16[16,48], index: 3, kind: input, shape index: {}]   ;;  %s1169_s4 = inlined_call_operand.vmem [shape: f32[16,1], index: 4, kind: input, shape index: {}]   ;;  %s1170_s5 = inlined_call_operand.vmem [shape: bf16[16,4], index: 5, kind: input, shape index: {}]   ;;  %s1171_s6 = inlined_call_operand.hbm [shape: f32[16,1], index: 6, kind: input, shape index: {}]   ;;  %s1172_s7 = inlined_call_operand.vmem [shape: f32[2,16,16], index: 7, kind: output, shape index: {}]  }
   0x1   :  { %s1032_s26 = smov 0  }
   0x2 LB: > { %s778_s27 = sadd.s32 4294967295, %s978_s26   ;;  %s30_s28 = sadd.s32 1, %s974_s25  ;;  %s978_s26 = sphi %s1032_s26, %s18_s26   ;;  %s974_s25 = sphi %s1030_s25, %s1182_s25   ;;  %s970_s24 = sphi %s1028_s24, %s1181_s24  }
   0x3   : > { %p32_p0 = scmp.ge.s32.totalorder %s30_s28, 2  ;;  %p780_p1 = scmp.ge.s32.totalorder %s978_s26, 1 }
   0x4   : > { %p215_p2 = scmp.lt.s32.totalorder %s978_s26, 3  ;;  %p1053_p4 = scmp.eq.s32.totalorder %s778_s27, 0 }
   0x5   : > { %s1184_s28 = smov (%p32_p0, %s30_s28), 0  ;;  %s980_s8 = smov [#allocation2]  }
   0x6   : > { %p1049_p3 = pnand %p780_p1, %p215_p2  ;;  %s242_s9 = sshll.u32 %s980_s8, 4  ;;  %s243_s9 = int_to_ptr.vmem [resolvable:$true] %s242_s9 }
   0x7   : > { %s1177_s30 = scalar_select %p1053_p4, 1, 0 }
   0x8   : > { %s1176_s29 = scalar_select %p1049_p3, 1, 0 }
   0x9   : > { %p873_p5 = pneg %p1049_p3  ;;  %s924_s13 = scalar_lea.hbm %s1171_s6, 256 }
   0xa   : > { %p925_p7 = scmp.ne.s32.totalorder %s1171_s6, %s924_s13  ;;  %p931_p11 = scmp.lt.u32.totalorder %s924_s13, %s1171_s6 }
   0xb   : > { %p1061_p6 = pnand %p1053_p4, %p873_p5 }
   0xd   : > { %p926_p8 = pneg %p1061_p6 }
   0xf   : > { %p927_p9 = pnand %p926_p8, %p925_p7 }
  0x11   : > { %p928_p10 = pneg %p927_p9 }
  0x13   : > { %p933_p12 = pnand %p931_p11, %p928_p10 }
  0x15   : > { %936 = shalt.err (!%p933_p12)
}
  0x16   : > { %s937_s18 = scalar_lea.vmem %s243_s9, 256  ;;  %p945_p2 = scmp.lt.s32.totalorder %s243_s9, %s243_s9 }
  0x17   : > { %p938_p13 = scmp.ne.s32.totalorder %s243_s9, %s937_s18  ;;  %p946_p5 = scmp.lt.s32.totalorder %s937_s18, %s937_s18 }
  0x19   : > { %p940_p0 = pnand %p938_p13, %p926_p8  ;;  %p947_p4 = por %p946_p5, %p945_p2 }
  0x1b   : > { %p941_p1 = pneg %p940_p0 }
  0x1d   : > { %p948_p3 = pnand %p947_p4, %p941_p1 }
  0x1f   : > { %951 = shalt.err (!%p948_p3)
}
  0x20   : > { %s981_s19 = smov 128   ;;  %s982_s20 = smov 8  }
  0x21   : > { %876 = dma.hbm_to_vmem [thread:$0]  (!%p1061_p6), %s1171_s6, 256, %s243_s9, [#allocation3], %s981_s19, %s981_s19, %s982_s20  }
  0x22   : > { %p1179_p7 = scmp.ne.s32.totalorder %s1176_s29, 0 }
  0x23   : > { %p1180_p9 = scmp.ne.s32.totalorder (!%p1179_p7), %s1177_s30, 0 }
  0x24   : > { %265 = sbr.rel (%p1179_p7) target bundleno = 795 (0x31b), region = 48 }
  0x2b   : > { %965 = dma.done.wait (%p1180_p9), [#allocation3], 256  }
  0x2c   : > { %967 = vsyncadd (%p1180_p9), [#allocation3], 4294967040  ;;  %p299_p3 = scmp.lt.s32.totalorder %s970_s24, 1  ;;  %v983_v0 = vmov 0.0   ;;  %vm984_vm0 = vmmov 0   ;;  %vm340_vm1 = vcmask 1041408   ;;  %v584_v27 = vlaneseq }
  0x2d   : > { %823 = vmatprep.subr.bf16.mxu1 %v983_v0  ;;  %817 = vmatprep.subr.bf16.mxu0 %v983_v0  ;;  %s985_s8 = smov 127   ;;  %v913_v13 = vld [vmem:[%s1166_s1] sm:$0xff]   ;;  %vm336_vm2 = vcmask 31744   ;;  %s986_s13 = smov 126   ;;  %v987_v16 = vmov 0   ;;  %v396_v17 = vld [vmem:[%s1167_s2 + $0x8] sm:$0xff] }
  0x2e   : > { %s1186_s24 = smov (!%p299_p3, %s970_s24), 1  ;;  %825 = vmatprep.mubr.msk.bf16.mxu1 %vm984_vm0, %v983_v0  ;;  %819 = vmatprep.mubr.msk.bf16.mxu0 %vm984_vm0, %v983_v0  ;;  %v395_v14 = vld [vmem:[%s1167_s2] sm:$0xff]  ;;  %v914_v20 = vld [vmem:[%s1166_s1 + $0x8] sm:$0xff]   ;;  %v915_v23 = vld [vmem:[%s1166_s1 + $0x10] sm:$0xff]   ;;  %v585_v28 = vand.u32 127, %v584_v27  ;;  %vm638_vm6 = vcmask 392192  }
  0x2f   : > { %s785_s23 = sshll.u32 %s1186_s24, 2  ;;  %911 = vset.pattern.permute.xlu1 %v987_v16  ;;  %912 = vset.pattern.permute.xlu0 %v987_v16  ;;  %v916_v26 = vld [vmem:[%s1170_s5] sm:$0xff]   ;;  %v317_v60 = vld [vmem:[#allocation2 + $0x8] sm:$0xff]  ;;  %s804_s9 = sshll.u32 %s1186_s24, 4  ;;  %vm685_vm7 = vcmask 130048  }
  0x30   : > { %s302_s30 = scalar_lea.vmem %s1165_s0, %s785_s23  ;;  %399 = vperm.xlu1 %911, %v395_v14   ;;  %v587_v29 = vadd.s32 4294967295, %v585_v28  ;;  %v316_v59 = vld [vmem:[#allocation2] sm:$0xff]  ;;  %v622_v62 = vld [vmem:[%s1169_s4 + $0x8] sm:$0xff]  ;;  %s310_s12 = scalar_lea.vmem %s1172_s7, %s804_s9 }
  0x31   : > { %v312_v1 = vld [vmem:[%s302_s30] sm:$0xf] }
  0x32   : > { %v385_v2 = vmul.f32 %v312_v1, %v312_v1  ;;  %v315_v15 = vpack.c.bf16 %v312_v1, %v312_v1  ;;  %vm588_vm3 = vcmp.ge.s32.totalorder %v587_v29, 0  ;;  %vm589_vm4 = vcmp.lt.s32.totalorder %v587_v29, 16  ;;  %v621_v61 = vld [vmem:[%s1169_s4] sm:$0xff] }
  0x33   : > { %vm590_vm5 = vmand %vm588_vm3, %vm589_vm4 }
  0x34   : > { %v386_v3 = vmul.f32 %v385_v2, %v312_v1  ;;  %404 = vperm.xlu1 %911, %v396_v17   ;;  %v917_v2 = vld [vmem:[%s1168_s3] sm:$0xff]  }
  0x36   : > { %v387_v4 = vmul.f32 0.044715, %v386_v3 }
  0x38   : > { %v388_v5 = vadd.f32 %v387_v4, %v312_v1 }
  0x3a   : > { %v389_v6 = vmul.f32 0.7978846, %v388_v5 }
  0x3c   : > { %918 = vtanh.f32 %v389_v6 }
  0x46   : > { %v919_v7 = vpop.eup %918 }
  0x47   : > { %v391_v8 = vadd.f32 1.0, %v919_v7 }
  0x49   : > { %v392_v9 = vmul.f32 0.5, %v391_v8 }
  0x4b   : > { %v393_v10 = vmul.f32 %v392_v9, %v312_v1 }
  0x4d   : > { %v394_v11 = vpack.c.bf16 %v393_v10, %v393_v10 }
  0x4f   : > { %472 = vrot.lane.b32.xlu0 %v394_v11, %s985_s8  ;;  %v418_v12 = vsel %vm340_vm1, %v394_v11, 0 }
  0x50   : > { %824 = vmatpush3.bf16.msra.mxu1 %v418_v12 }
  0x51   : > { %829 = vmatprep.subr.bf16.mxu1 %v983_v0 }
  0x53   : > { %531 = vrot.lane.b32.xlu0 %v394_v11, %s986_s13  ;;  %826 = vmatmul.mubr.msk.bf16.vlgmr.msra.gmra.mrb[0].mxu1 %vm336_vm2, %v913_v13 }
  0x54   : > { %831 = vmatprep.mubr.msk.bf16.mxu1 %vm984_vm0, %v983_v0 }
  0x57   : > { %334 = vrot.lane.b32.xlu0 %v315_v15, %s986_s13 }
  0xaf   : > { %v400_v30 = vpop.permute.xlu1 %399 }
  0xb3   : > { %v405_v34 = vpop.permute.xlu1 %404 }
  0xc1   : > { %v473_v18 = vpop.permute.xlu0 %472 }
  0xc2   : > { %v478_v19 = vsel %vm340_vm1, %v473_v18, 0 }
  0xc3   : > { %830 = vmatpush3.bf16.msra.mxu1 %v478_v19 }
  0xc4   : > { %835 = vmatprep.subr.bf16.mxu1 %v983_v0 }
  0xc5   : > { %v532_v21 = vpop.permute.xlu0 %531 }
  0xc6   : > { %832 = vmatmul.mubr.msk.bf16.vlgmr.msra.gmra.mrb[0].mxu1 %vm336_vm2, %v914_v20  ;;  %v537_v22 = vsel %vm340_vm1, %v532_v21, 0 }
  0xc7   : > { %836 = vmatpush3.bf16.msra.mxu1 %v537_v22  ;;  %837 = vmatprep.mubr.msk.bf16.mxu1 %vm984_vm0, %v983_v0 }
  0xc9   : > { %v335_v24 = vpop.permute.xlu0 %334 }
  0xca   : > { %v342_v25 = vsel %vm340_vm1, %v335_v24, 0 }
  0xcb   : > { %818 = vmatpush3.bf16.msra.mxu0 %v342_v25 }
  0xcc   : > { %841 = vmatprep.subr.bf16.mxu0 %v983_v0 }
  0xce   : > { %820 = vmatmul.mubr.msk.bf16.vlgmr.msra.gmra.mrb[0].mxu0 %vm336_vm2, %v916_v26 }
  0xcf   : > { %847 = vmatprep.mubr.msk.bf16.mxu0 %vm984_vm0, %v983_v0 }
  0xd2   : > { %838 = vmatmul.mubr.msk.bf16.vlgmr.msra.gmra.mrb[0].mxu1 %vm336_vm2, %v915_v23 }
 0x1a5   : > { %v573_v31 = vpop.f32.mrb[0].mxu1 }
 0x1a6   : > { %v855_v32 = vadd.f32 %v573_v31, %v400_v30  ;;  %v839_v33 = vpop.f32.mrb[1].mxu1 }
 0x1a7   : > { %v576_v35 = vpop.f32.mrb[2].mxu1 }
 0x1a8   : > { %v591_v36 = vsel %vm590_vm5, %v855_v32, 0.0  ;;  %v856_v37 = vadd.f32 %v576_v35, %v405_v34  ;;  %v840_v38 = vpop.f32.mrb[3].mxu1 }
 0x1a9   : > { %v593_v39 = vmul.f32 %v591_v36, %v591_v36 }
 0x1aa   : > { %v592_v40 = vsel %vm590_vm5, %v856_v37, 0.0 }
 0x1ab   : > { %v595_v41 = vmul.f32 %v593_v39, %v591_v36  ;;  %v594_v42 = vmul.f32 %v592_v40, %v592_v40 }
 0x1ad   : > { %v597_v43 = vmul.f32 0.044715, %v595_v41  ;;  %v596_v44 = vmul.f32 %v594_v42, %v592_v40 }
 0x1af   : > { %v599_v45 = vadd.f32 %v597_v43, %v591_v36  ;;  %v598_v46 = vmul.f32 0.044715, %v596_v44 }
 0x1b1   : > { %v601_v47 = vmul.f32 0.7978846, %v599_v45  ;;  %v600_v48 = vadd.f32 %v598_v46, %v592_v40 }
 0x1b3   : > { %920 = vtanh.f32 %v601_v47  ;;  %v602_v49 = vmul.f32 0.7978846, %v600_v48 }
 0x1b5   : > { %922 = vtanh.f32 %v602_v49 }
 0x1bd   : > { %v921_v50 = vpop.eup %920 }
 0x1be   : > { %v605_v51 = vadd.f32 1.0, %v921_v50 }
 0x1bf   : > { %v923_v52 = vpop.eup %922 }
 0x1c0   : > { %v606_v53 = vadd.f32 1.0, %v923_v52  ;;  %v607_v54 = vmul.f32 0.5, %v605_v51 }
 0x1c2   : > { %v608_v55 = vmul.f32 0.5, %v606_v53  ;;  %v609_v56 = vmul.f32 %v607_v54, %v591_v36 }
 0x1c4   : > { %v610_v57 = vmul.f32 %v608_v55, %v592_v40 }
 0x1c6   : > { %v611_v58 = vpack.c.bf16 %v610_v57, %v609_v56 }
 0x1c8   : > { %613 = vrot.lane.b32.xlu1 %v611_v58, %s985_s8  ;;  %616 = vrot.lane.b32.xlu0 %v611_v58, %s986_s13 }
 0x1c9   : > { %842 = vmatpush3.bf16.msra.mxu0 %v611_v58 }
 0x1ca   : > { %843 = vmatprep.subr.bf16.mxu0 %v983_v0 }
 0x1cc   : > { %320 = vperm.xlu1 %911, %v316_v59   ;;  %325 = vperm.xlu0 %912, %v317_v60  }
 0x1d0   : > { %625 = vperm.xlu1 %911, %v621_v61  }
 0x1d4   : > { %630 = vperm.xlu1 %911, %v622_v62  }
 0x23a   : > { %v614_v63 = vpop.permute.xlu1 %613  ;;  %v617_v1 = vpop.permute.xlu0 %616 }
 0x23b   : > { %844 = vmatpush3.bf16.msra.mxu0 %v614_v63 }
 0x23c   : > { %845 = vmatprep.subr.bf16.mxu0 %v983_v0 }
 0x23f   : > { %846 = vmatpush3.bf16.msra.mxu0 %v617_v1 }
 0x242   : > { %848 = vmatmul.mubr.msk.bf16.vlgmr.msra.gmra.mrb[0].mxu0 %vm638_vm6, %v917_v2 }
 0x24b   : > { %v321_v3 = vpop.permute.xlu1 %320  ;;  %v326_v6 = vpop.permute.xlu0 %325 }
 0x24f   : > { %v626_v4 = vpop.permute.xlu1 %625 }
 0x250   : > { %v851_v7 = vadd.f32 %v626_v4, %v321_v3 }
 0x253   : > { %v631_v5 = vpop.permute.xlu1 %630 }
 0x254   : > { %v853_v0 = vadd.f32 %v631_v5, %v326_v6 }
 0x315   : > { %v676_v8 = vpop.f32.mrb[0].mxu0 }
 0x316   : > { %v852_v9 = vadd.f32 %v851_v7, %v676_v8  ;;  %v849_v10 = vpop.f32.mrb[1].mxu0 }
 0x317   : > { %v679_v11 = vpop.f32.mrb[2].mxu0 }
 0x318   : > { %686 = vst.msk [vmem:[%s310_s12] sm:$0xff] %vm685_vm7, %v852_v9  ;;  %v854_v12 = vadd.f32 %v853_v0, %v679_v11  ;;  %v850_v13 = vpop.f32.mrb[3].mxu0 }
 0x31a   : > { %687 = vst.msk [vmem:[%s310_s12 + $0x8] sm:$0xff] %vm685_vm7, %v854_v12 }
 0x31b PF: > { %s18_s26 = sadd.s32 1, %s978_s26   ;;  %s1181_s24 = smov %s974_s25 }
 0x31c   : > { %p15_p4 = scmp.ge.s32.totalorder %s18_s26, 4   ;;  %s1182_s25 = smov %s1184_s28 }
 0x31e   :  { %17 = sbr.rel (!%p15_p4) target bundleno = 2 (0x2), region = 85 }
 0x325   :  { %715 = vsyncpa [#allocation3], 1 }
 0x326   :  { %717 = vsyncpa [#allocation3 + $0x1], 1 }

// kernel: _lambda_.4
= control target key start
LH: loop header
LB: loop body
LE: loop exit
PB: predicated region body
PF: predicated region fallthrough
CT: control target
= control target key end

     0   :  { %s673_s18 = smov 0   ;;  %s675_s19 = smov 0   ;;  %s763_s0 = inlined_call_operand.vmem [shape: f32[2,16,24], index: 0, kind: input, shape index: {}]   ;;  %s764_s1 = inlined_call_operand.vmem [shape: bf16[16,48], index: 1, kind: input, shape index: {}]   ;;  %s765_s2 = inlined_call_operand.vmem [shape: f32[16,1], index: 2, kind: input, shape index: {}]   ;;  %s766_s3 = inlined_call_operand.vmem [shape: bf16[16,48], index: 3, kind: input, shape index: {}]   ;;  %s767_s4 = inlined_call_operand.vmem [shape: f32[16,1], index: 4, kind: input, shape index: {}]   ;;  %s768_s5 = inlined_call_operand.vmem [shape: f32[2,16,16], index: 5, kind: output, shape index: {}]  }
   0x1   :  { %s677_s20 = smov 0  }
   0x2 LB: > { %s27_s21 = sadd.s32 1, %s632_s19  ;;  %p532_p0 = scmp.ge.s32.totalorder %s636_s20, 1  ;;  %s636_s20 = sphi %s677_s20, %s15_s20   ;;  %s632_s19 = sphi %s675_s19, %s770_s19   ;;  %s628_s18 = sphi %s673_s18, %s769_s18  }
   0x3   : > { %p29_p1 = scmp.ge.s32.totalorder %s27_s21, 2  ;;  %p201_p2 = scmp.lt.s32.totalorder %s636_s20, 3 }
   0x5   : > { %s772_s21 = smov (%p29_p1, %s27_s21), 0  ;;  %p202_p3 = pnand %p532_p0, %p201_p2 }
   0x6   : > { %p232_p4 = scmp.lt.s32.totalorder (!%p202_p3), %s628_s18, 1  ;;  %v638_v0 = vmov (!%p202_p3), 0.0   ;;  %vm639_vm0 = vmmov (!%p202_p3), 0   ;;  %v276_v19 = vld [vmem:[%s765_s2] sm:$0xff] (!%p202_p3)  ;;  %v640_v21 = vmov (!%p202_p3), 0   ;;  %v277_v24 = vld [vmem:[%s765_s2 + $0x8] sm:$0xff] (!%p202_p3)  ;;  %v340_v28 = vlaneseq (!%p202_p3) }
   0x7   : > { %205 = sbr.rel (%p202_p3) target bundleno = 757 (0x2f5), region = 40  ;;  %553 = vmatprep.subr.bf16.mxu0 (!%p202_p3), %v638_v0  ;;  %563 = vmatprep.subr.bf16.mxu1 (!%p202_p3), %v638_v0  ;;  %s641_s30 = smov (!%p202_p3), 126   ;;  %v604_v27 = vld [vmem:[%s764_s1] sm:$0xff] (!%p202_p3)   ;;  %vm293_vm1 = vcmask (!%p202_p3), 392192   ;;  %v378_v60 = vld [vmem:[%s767_s4 + $0x8] sm:$0xff] (!%p202_p3)  ;;  %vm448_vm5 = vcmask (!%p202_p3), 130048  }
   0x8   : > { %559 = vmatprep.mubr.msk.bf16.mxu0 (!%p202_p3), %vm639_vm0, %v638_v0  ;;  %569 = vmatprep.mubr.msk.bf16.mxu1 (!%p202_p3), %vm639_vm0, %v638_v0  ;;  %s642_s6 = smov (!%p202_p3), 124   ;;  %v341_v29 = vand.u32 (!%p202_p3), 127, %v340_v28  ;;  %v377_v61 = vld [vmem:[%s767_s4] sm:$0xff] (!%p202_p3) }
   0x9   : > { %602 = vset.pattern.permute.xlu1 (!%p202_p3), %v640_v21  ;;  %603 = vset.pattern.permute.xlu0 (!%p202_p3), %v640_v21 }
   0xa   : > { %280 = vperm.xlu1 (!%p202_p3), %602, %v276_v19   ;;  %v343_v30 = vadd.s32 (!%p202_p3), 4294967294, %v341_v29 }
   0xc   : > { %vm344_vm2 = vcmp.ge.s32.totalorder (!%p202_p3), %v343_v30, 0  ;;  %vm345_vm3 = vcmp.lt.s32.totalorder (!%p202_p3), %v343_v30, 16 }
   0xd   : > { %vm346_vm4 = vmand (!%p202_p3), %vm344_vm2, %vm345_vm3 }
   0xe   : > { %s774_s18 = smov (!%p232_p4, %s628_s18), 1  ;;  %285 = vperm.xlu1 %602, %v277_v24  }
   0xf   : > { %s543_s22 = sshll.u32 %s774_s18, 4 }
  0x10   : > { %s236_s25 = scalar_lea.vmem %s763_s0, %s543_s22  ;;  %s244_s17 = scalar_lea.vmem %s768_s5, %s543_s22 }
  0x11   : > { %v701_v1 = vld [vmem:[%s236_s25] sm:$0xff]  ;;  %v703_v2 = vld [vmem:[%s236_s25 + $0x8] sm:$0xff] }
  0x12   : > { %v248_v3 = vmul.f32 %v701_v1, %v701_v1  ;;  %v249_v4 = vmul.f32 %v703_v2, %v703_v2 }
  0x14   : > { %v250_v5 = vmul.f32 %v248_v3, %v701_v1  ;;  %v251_v6 = vmul.f32 %v249_v4, %v703_v2  ;;  %v605_v3 = vld [vmem:[%s766_s3] sm:$0xff]  }
  0x16   : > { %v252_v7 = vmul.f32 0.044715, %v250_v5  ;;  %v253_v8 = vmul.f32 0.044715, %v251_v6 }
  0x18   : > { %v254_v9 = vadd.f32 %v252_v7, %v701_v1  ;;  %v255_v10 = vadd.f32 %v253_v8, %v703_v2 }
  0x1a   : > { %v256_v11 = vmul.f32 0.7978846, %v254_v9  ;;  %v257_v12 = vmul.f32 0.7978846, %v255_v10 }
  0x1c   : > { %606 = vtanh.f32 %v256_v11 }
  0x1d   : > { %608 = vtanh.f32 %v257_v12 }
  0x26   : > { %v607_v13 = vpop.eup %606 }
  0x27   : > { %v609_v14 = vpop.eup %608  ;;  %v260_v15 = vadd.f32 1.0, %v607_v13 }
  0x28   : > { %v261_v16 = vadd.f32 1.0, %v609_v14 }
  0x29   : > { %v262_v17 = vmul.f32 0.5, %v260_v15 }
  0x2a   : > { %v263_v18 = vmul.f32 0.5, %v261_v16 }
  0x2b   : > { %v264_v20 = vmul.f32 %v262_v17, %v701_v1 }
  0x2c   : > { %v265_v22 = vmul.f32 %v263_v18, %v703_v2 }
  0x2e   : > { %v266_v23 = vpack.c.bf16 %v265_v22, %v264_v20 }
  0x30   : > { %268 = vrot.lane.b32.xlu0 %v266_v23, %s641_s30  ;;  %554 = vmatpush3.bf16.msra.mxu0 %v266_v23 }
  0x31   : > { %555 = vmatprep.subr.bf16.mxu0 %v638_v0 }
  0x34   : > { %271 = vrot.lane.b32.xlu0 %v266_v23, %s642_s6 }
  0x89   : > { %v281_v31 = vpop.permute.xlu1 %280 }
  0x8d   : > { %v286_v35 = vpop.permute.xlu1 %285 }
  0xa2   : > { %v269_v25 = vpop.permute.xlu0 %268 }
  0xa3   : > { %556 = vmatpush3.bf16.msra.mxu0 %v269_v25 }
  0xa4   : > { %557 = vmatprep.subr.bf16.mxu0 %v638_v0 }
  0xa6   : > { %v272_v26 = vpop.permute.xlu0 %271 }
  0xa7   : > { %558 = vmatpush3.bf16.msra.mxu0 %v272_v26 }
  0xaa   : > { %560 = vmatmul.mubr.msk.bf16.vlgmr.msra.gmra.mrb[0].mxu0 %vm293_vm1, %v604_v27 }
 0x17d   : > { %v331_v32 = vpop.f32.mrb[0].mxu0 }
 0x17e   : > { %v332_v33 = vadd.f32 %v331_v32, %v281_v31  ;;  %v561_v34 = vpop.f32.mrb[1].mxu0 }
 0x17f   : > { %v334_v36 = vpop.f32.mrb[2].mxu0 }
 0x180   : > { %v347_v37 = vsel %vm346_vm4, %v332_v33, 0.0  ;;  %v335_v38 = vadd.f32 %v334_v36, %v286_v35  ;;  %v562_v39 = vpop.f32.mrb[3].mxu0 }
 0x181   : > { %v349_v40 = vmul.f32 %v347_v37, %v347_v37 }
 0x182   : > { %v348_v41 = vsel %vm346_vm4, %v335_v38, 0.0 }
 0x183   : > { %v351_v42 = vmul.f32 %v349_v40, %v347_v37  ;;  %v350_v43 = vmul.f32 %v348_v41, %v348_v41 }
 0x185   : > { %v353_v44 = vmul.f32 0.044715, %v351_v42  ;;  %v352_v45 = vmul.f32 %v350_v43, %v348_v41 }
 0x187   : > { %v355_v46 = vadd.f32 %v353_v44, %v347_v37  ;;  %v354_v47 = vmul.f32 0.044715, %v352_v45 }
 0x189   : > { %v357_v48 = vmul.f32 0.7978846, %v355_v46  ;;  %v356_v49 = vadd.f32 %v354_v47, %v348_v41 }
 0x18b   : > { %610 = vtanh.f32 %v357_v48  ;;  %v358_v50 = vmul.f32 0.7978846, %v356_v49 }
 0x18d   : > { %612 = vtanh.f32 %v358_v50 }
 0x195   : > { %v611_v51 = vpop.eup %610 }
 0x196   : > { %v361_v52 = vadd.f32 1.0, %v611_v51 }
 0x197   : > { %v613_v53 = vpop.eup %612 }
 0x198   : > { %v362_v54 = vadd.f32 1.0, %v613_v53  ;;  %v363_v55 = vmul.f32 0.5, %v361_v52 }
 0x19a   : > { %v364_v56 = vmul.f32 0.5, %v362_v54  ;;  %v365_v57 = vmul.f32 %v363_v55, %v347_v37 }
 0x19c   : > { %v366_v58 = vmul.f32 %v364_v56, %v348_v41 }
 0x19e   : > { %v367_v59 = vpack.c.bf16 %v366_v58, %v365_v57 }
 0x1a0   : > { %372 = vrot.lane.b32.xlu1 %v367_v59, %s642_s6  ;;  %369 = vrot.lane.b32.xlu0 %v367_v59, %s641_s30 }
 0x1a1   : > { %564 = vmatpush3.bf16.msra.mxu1 %v367_v59 }
 0x1a2   : > { %565 = vmatprep.subr.bf16.mxu1 %v638_v0 }
 0x1a4   : > { %386 = vperm.xlu1 %602, %v378_v60   ;;  %381 = vperm.xlu0 %603, %v377_v61  }
 0x1a8   : > { %440 = vrot.lane.b32.xlu1 %v701_v1, %s642_s6  ;;  %442 = vrot.lane.b32.xlu0 %v703_v2, %s642_s6 }
 0x212   : > { %v370_v62 = vpop.permute.xlu0 %369  ;;  %v373_v63 = vpop.permute.xlu1 %372 }
 0x213   : > { %566 = vmatpush3.bf16.msra.mxu1 %v370_v62 }
 0x214   : > { %567 = vmatprep.subr.bf16.mxu1 %v638_v0 }
 0x217   : > { %568 = vmatpush3.bf16.msra.mxu1 %v373_v63 }
 0x21a   : > { %570 = vmatmul.mubr.msk.bf16.vlgmr.msra.gmra.mrb[0].mxu1 %vm293_vm1, %v605_v3 }
 0x223   : > { %v387_v4 = vpop.permute.xlu1 %386  ;;  %v382_v5 = vpop.permute.xlu0 %381 }
 0x227   : > { %v441_v7 = vpop.permute.xlu1 %440  ;;  %v443_v2 = vpop.permute.xlu0 %442 }
 0x2ed   : > { %v431_v6 = vpop.f32.mrb[0].mxu1 }
 0x2ee   : > { %v432_v1 = vadd.f32 %v431_v6, %v382_v5  ;;  %v571_v8 = vpop.f32.mrb[1].mxu1 }
 0x2ef   : > { %v434_v0 = vpop.f32.mrb[2].mxu1 }
 0x2f0   : > { %v446_v9 = vadd.f32 %v441_v7, %v432_v1  ;;  %v435_v10 = vadd.f32 %v434_v0, %v387_v4  ;;  %v572_v11 = vpop.f32.mrb[3].mxu1 }
 0x2f2   : > { %449 = vst.msk [vmem:[%s244_s17] sm:$0xff] %vm448_vm5, %v446_v9  ;;  %v447_v12 = vadd.f32 %v443_v2, %v435_v10 }
 0x2f4   : > { %450 = vst.msk [vmem:[%s244_s17 + $0x8] sm:$0xff] %vm448_vm5, %v447_v12 }
 0x2f5 PF: > { %s15_s20 = sadd.s32 1, %s636_s20   ;;  %s769_s18 = smov %s632_s19 }
 0x2f6   : > { %p12_p5 = scmp.ge.s32.totalorder %s15_s20, 4   ;;  %s770_s19 = smov %s772_s21 }
 0x2f8   :  { %14 = sbr.rel (!%p12_p5) target bundleno = 2 (0x2), region = 70 }

// kernel: _lambda_.5
= control target key start
LH: loop header
LB: loop body
LE: loop exit
PB: predicated region body
PF: predicated region fallthrough
CT: control target
= control target key end

     0   :  { %s964_s24 = smov 0   ;;  %s966_s25 = smov 0   ;;  %s1094_s0 = inlined_call_operand.vmem [shape: f32[2,16,32], index: 0, kind: input, shape index: {}]   ;;  %s1095_s1 = inlined_call_operand.vmem [shape: bf16[32,48], index: 1, kind: input, shape index: {}]   ;;  %s1096_s2 = inlined_call_operand.vmem [shape: f32[32,1], index: 2, kind: input, shape index: {}]   ;;  %s1097_s3 = inlined_call_operand.vmem [shape: bf16[32,96], index: 3, kind: input, shape index: {}]   ;;  %s1098_s4 = inlined_call_operand.vmem [shape: f32[32,1], index: 4, kind: input, shape index: {}]   ;;  %s1099_s5 = inlined_call_operand.vmem [shape: bf16[32,16], index: 5, kind: input, shape index: {}]   ;;  %s1100_s6 = inlined_call_operand.vmem [shape: f32[32,1], index: 6, kind: input, shape index: {}]   ;;  %s1101_s7 = inlined_call_operand.vmem [shape: f32[2,32,16], index: 7, kind: output, shape index: {}]  }
   0x1   :  { %s968_s26 = smov 0  }
   0x2 LB: > { %s29_s27 = sadd.s32 1, %s915_s25  ;;  %p769_p0 = scmp.ge.s32.totalorder %s919_s26, 1  ;;  %s919_s26 = sphi %s968_s26, %s17_s26   ;;  %s915_s25 = sphi %s966_s25, %s1105_s25   ;;  %s911_s24 = sphi %s964_s24, %s1104_s24  }
   0x3   : > { %p31_p1 = scmp.ge.s32.totalorder %s29_s27, 2  ;;  %p251_p2 = scmp.lt.s32.totalorder %s919_s26, 3 }
   0x5   : > { %s1107_s27 = smov (%p31_p1, %s29_s27), 0  ;;  %p252_p3 = pnand %p769_p0, %p251_p2 }
   0x6   : > { %p286_p4 = scmp.lt.s32.totalorder (!%p252_p3), %s911_s24, 1  ;;  %v879_v0 = vld [vmem:[%s1099_s5] sm:$0xff] (!%p252_p3)   ;;  %vm345_vm0 = vcmask (!%p252_p3), 130048   ;;  %s921_s11 = smov (!%p252_p3), 120   ;;  %v922_v22 = vmov (!%p252_p3), 0   ;;  %v432_v25 = vld [vmem:[%s1096_s2 + $0x8] sm:$0xff] (!%p252_p3)  ;;  %v523_v38 = vlaneseq (!%p252_p3) }
   0x7   : > { %255 = sbr.rel (%p252_p3) target bundleno = 767 (0x2ff), region = 48  ;;  %808 = vmatprep.mubr.msk.bf16.mxu1 (!%p252_p3), %vm345_vm0, %v879_v0  ;;  %877 = vset.pattern.permute.xlu1 (!%p252_p3), %v922_v22  ;;  %s923_s12 = smov (!%p252_p3), 124   ;;  %v431_v24 = vld [vmem:[%s1096_s2] sm:$0xff] (!%p252_p3)  ;;  %v433_v26 = vld [vmem:[%s1096_s2 + $0x10] sm:$0xff] (!%p252_p3)  ;;  %v434_v27 = vld [vmem:[%s1096_s2 + $0x18] sm:$0xff] (!%p252_p3)  ;;  %vm465_vm1 = vcmask (!%p252_p3), 392192  }
   0x8   : > { %878 = vset.pattern.permute.xlu0 (!%p252_p3), %v922_v22  ;;  %v880_v29 = vld [vmem:[%s1099_s5 + $0x8] sm:$0xff] (!%p252_p3)   ;;  %v881_v30 = vld [vmem:[%s1095_s1] sm:$0xff] (!%p252_p3)   ;;  %v524_v39 = vand.u32 (!%p252_p3), 127, %v523_v38  ;;  %vm624_vm5 = vcmask (!%p252_p3), 785408   ;;  %v592_v44 = vld [vmem:[%s1098_s4 + $0x10] sm:$0xff] (!%p252_p3) }
   0x9   : > { %v882_v33 = vld [vmem:[%s1095_s1 + $0x8] sm:$0xff] (!%p252_p3)   ;;  %v307_v38 = vld [vmem:[%s1100_s6] sm:$0xff] (!%p252_p3) }
   0xa   : > { %v526_v41 = vadd.s32 (!%p252_p3), 4294967292, %v524_v39  ;;  %v310_v39 = vld [vmem:[%s1100_s6 + $0x18] sm:$0xff] (!%p252_p3) }
   0xc   : > { %vm527_vm2 = vcmp.ge.s32.totalorder (!%p252_p3), %v526_v41, 0  ;;  %vm528_vm3 = vcmp.lt.s32.totalorder (!%p252_p3), %v526_v41, 16  ;;  %v591_v41 = vld [vmem:[%s1098_s4 + $0x8] sm:$0xff] (!%p252_p3) }
   0xd   : > { %vm1025_vm4 = vmand (!%p252_p3), %vm527_vm2, %vm528_vm3 }
   0xe   : > { %s1109_s24 = smov (!%p286_p4, %s911_s24), 1 }
   0xf   : > { %s788_s30 = sshll.u32 %s1109_s24, 4  ;;  %s789_s9 = sshll.u32 %s1109_s24, 5 }
  0x10   : > { %s290_s10 = scalar_lea.vmem %s1094_s0, %s788_s30 }
  0x11   : > { %v300_v1 = vld [vmem:[%s290_s10] sm:$0xff]  ;;  %v301_v2 = vld [vmem:[%s290_s10 + $0x8] sm:$0xff] }
  0x12   : > { %v306_v3 = vpack.c.bf16 %v301_v2, %v300_v1  ;;  %v401_v4 = vmul.f32 %v300_v1, %v300_v1  ;;  %v402_v5 = vmul.f32 %v301_v2, %v301_v2 }
  0x14   : > { %v403_v6 = vmul.f32 %v401_v4, %v300_v1  ;;  %v404_v7 = vmul.f32 %v402_v5, %v301_v2  ;;  %342 = vrot.lane.b32.xlu0 %v306_v3, %s921_s11 }
  0x16   : > { %v405_v8 = vmul.f32 0.044715, %v403_v6  ;;  %v406_v9 = vmul.f32 0.044715, %v404_v7 }
  0x18   : > { %v407_v10 = vadd.f32 %v405_v8, %v300_v1  ;;  %v408_v11 = vadd.f32 %v406_v9, %v301_v2 }
  0x1a   : > { %v409_v12 = vmul.f32 0.7978846, %v407_v10  ;;  %v410_v13 = vmul.f32 0.7978846, %v408_v11 }
  0x1c   : > { %885 = vtanh.f32 %v409_v12 }
  0x1d   : > { %887 = vtanh.f32 %v410_v13 }
  0x26   : > { %v886_v14 = vpop.eup %885 }
  0x27   : > { %v888_v15 = vpop.eup %887  ;;  %v413_v16 = vadd.f32 1.0, %v886_v14 }
  0x28   : > { %v414_v17 = vadd.f32 1.0, %v888_v15 }
  0x29   : > { %v415_v18 = vmul.f32 0.5, %v413_v16 }
  0x2a   : > { %v416_v19 = vmul.f32 0.5, %v414_v17 }
  0x2b   : > { %v417_v20 = vmul.f32 %v415_v18, %v300_v1 }
  0x2c   : > { %v418_v21 = vmul.f32 %v416_v19, %v301_v2 }
  0x2e   : > { %v419_v23 = vpack.c.bf16 %v418_v21, %v417_v20 }
  0x30   : > { %421 = vrot.lane.b32.xlu0 %v419_v23, %s923_s12  ;;  %424 = vrot.lane.b32.xlu1 %v419_v23, %s921_s11 }
  0x34   : > { %437 = vperm.xlu1 %877, %v431_v24   ;;  %442 = vperm.xlu0 %878, %v432_v25  }
  0x38   : > { %447 = vperm.xlu1 %877, %v433_v26  }
  0x3c   : > { %452 = vperm.xlu1 %877, %v434_v27  }
  0x86   : > { %v343_v28 = vpop.permute.xlu0 %342 }
  0x87   : > { %806 = vmatprep.subr.bf16.mxu1 %v343_v28 }
  0x88   : > { %807 = vmatpush3.bf16.msra.mxu1 %v343_v28 }
  0x89   : > { %812 = vmatprep.subr.bf16.mxu1 %v419_v23 }
  0x8b   : > { %809 = vmatmul.mubr.msk.bf16.vlgmr.msra.gmra.mrb[0].mxu1 %vm345_vm0, %v880_v29 }
  0x8c   : > { %813 = vmatpush3.bf16.msra.mxu1 %v419_v23  ;;  %818 = vmatprep.mubr.msk.bf16.mxu1 %vm465_vm1, %v881_v30 }
  0xa2   : > { %v422_v31 = vpop.permute.xlu0 %421  ;;  %v425_v32 = vpop.permute.xlu1 %424 }
  0xa3   : > { %814 = vmatprep.subr.bf16.mxu1 %v422_v31 }
  0xa4   : > { %815 = vmatpush3.bf16.msra.mxu1 %v422_v31 }
  0xa5   : > { %816 = vmatprep.subr.bf16.mxu1 %v425_v32 }
  0xa8   : > { %817 = vmatpush3.bf16.msra.mxu1 %v425_v32  ;;  %v883_v32 = vld [vmem:[%s1097_s3] sm:$0xff]  }
  0xa9   : > { %834 = vmatprep.mubr.msk.bf16.mxu0 %vm624_vm5, %v883_v32 }
  0xab   : > { %819 = vmatmul.mubr.msk.bf16.vlgmr.msra.gmra.mrb[4].mxu1 %vm465_vm1, %v882_v33  ;;  %v308_v33 = vld [vmem:[%s1100_s6 + $0x8] sm:$0xff] }
  0xb3   : > { %v438_v40 = vpop.permute.xlu1 %437  ;;  %v443_v47 = vpop.permute.xlu0 %442 }
  0xb7   : > { %v448_v42 = vpop.permute.xlu1 %447 }
  0xbb   : > { %v453_v48 = vpop.permute.xlu1 %452 }
 0x15e   : > { %v1017_v34 = vpop.f32.mrb[0].mxu1 }
 0x15f   : > { %v1019_v35 = vpop.f32.mrb[1].mxu1 }
 0x160   : > { %v1021_v36 = vpop.f32.mrb[2].mxu1 }
 0x161   : > { %v1023_v37 = vpop.f32.mrb[3].mxu1 }
 0x17e   : > { %v820_v43 = vpop.f32.mrb[4].mxu1 }
 0x17f   : > { %v515_v45 = vadd.f32 %v820_v43, %v448_v42  ;;  %v506_v46 = vpop.f32.mrb[5].mxu1  ;;  %v590_v42 = vld [vmem:[%s1098_s4] sm:$0xff]  ;;  %v593_v43 = vld [vmem:[%s1098_s4 + $0x18] sm:$0xff] }
 0x180   : > { %v507_v49 = vadd.f32 %v506_v46, %v438_v40  ;;  %v821_v50 = vpop.f32.mrb[6].mxu1  ;;  %v309_v40 = vld [vmem:[%s1100_s6 + $0x10] sm:$0xff] }
 0x181   : > { %v532_v51 = vsel %vm1025_vm4, %v515_v45, 0.0  ;;  %v518_v52 = vadd.f32 %v821_v50, %v453_v48  ;;  %v509_v53 = vpop.f32.mrb[7].mxu1 }
 0x182   : > { %v536_v54 = vmul.f32 %v532_v51, %v532_v51  ;;  %v530_v55 = vsel %vm1025_vm4, %v507_v49, 0.0  ;;  %v510_v56 = vadd.f32 %v509_v53, %v443_v47  ;;  %v884_v49 = vld [vmem:[%s1097_s3 + $0x8] sm:$0xff]  }
 0x183   : > { %v534_v57 = vmul.f32 %v530_v55, %v530_v55  ;;  %v533_v58 = vsel %vm1025_vm4, %v518_v52, 0.0 }
 0x184   : > { %v540_v59 = vmul.f32 %v536_v54, %v532_v51  ;;  %v537_v60 = vmul.f32 %v533_v58, %v533_v58  ;;  %v531_v61 = vsel %vm1025_vm4, %v510_v56, 0.0 }
 0x185   : > { %v538_v62 = vmul.f32 %v534_v57, %v530_v55  ;;  %v535_v63 = vmul.f32 %v531_v61, %v531_v61 }
 0x186   : > { %v544_v0 = vmul.f32 0.044715, %v540_v59  ;;  %v541_v1 = vmul.f32 %v537_v60, %v533_v58 }
 0x187   : > { %v542_v2 = vmul.f32 0.044715, %v538_v62  ;;  %v539_v3 = vmul.f32 %v535_v63, %v531_v61 }
 0x188   : > { %v548_v4 = vadd.f32 %v544_v0, %v532_v51  ;;  %v545_v5 = vmul.f32 0.044715, %v541_v1 }
 0x189   : > { %v546_v6 = vadd.f32 %v542_v2, %v530_v55  ;;  %v543_v7 = vmul.f32 0.044715, %v539_v3 }
 0x18a   : > { %v552_v8 = vmul.f32 0.7978846, %v548_v4  ;;  %v549_v9 = vadd.f32 %v545_v5, %v533_v58 }
 0x18b   : > { %v550_v10 = vmul.f32 0.7978846, %v546_v6  ;;  %v547_v11 = vadd.f32 %v543_v7, %v531_v61 }
 0x18c   : > { %889 = vtanh.f32 %v552_v8  ;;  %v553_v12 = vmul.f32 0.7978846, %v549_v9 }
 0x18d   : > { %891 = vtanh.f32 %v550_v10  ;;  %v551_v13 = vmul.f32 0.7978846, %v547_v11 }
 0x18e   : > { %893 = vtanh.f32 %v553_v12 }
 0x18f   : > { %895 = vtanh.f32 %v551_v13 }
 0x196   : > { %v890_v14 = vpop.eup %889 }
 0x197   : > { %v892_v15 = vpop.eup %891  ;;  %v560_v16 = vadd.f32 1.0, %v890_v14 }
 0x198   : > { %v894_v17 = vpop.eup %893  ;;  %v558_v18 = vadd.f32 1.0, %v892_v15 }
 0x199   : > { %v896_v19 = vpop.eup %895  ;;  %v564_v20 = vmul.f32 0.5, %v560_v16  ;;  %v561_v21 = vadd.f32 1.0, %v894_v17 }
 0x19a   : > { %v562_v22 = vmul.f32 0.5, %v558_v18  ;;  %v559_v23 = vadd.f32 1.0, %v896_v19 }
 0x19b   : > { %v565_v24 = vmul.f32 0.5, %v561_v21  ;;  %v568_v26 = vmul.f32 %v564_v20, %v532_v51 }
 0x19c   : > { %v563_v25 = vmul.f32 0.5, %v559_v23  ;;  %v566_v28 = vmul.f32 %v562_v22, %v530_v55 }
 0x19d   : > { %v569_v27 = vmul.f32 %v565_v24, %v533_v58 }
 0x19e   : > { %v567_v29 = vmul.f32 %v563_v25, %v531_v61 }
 0x19f   : > { %v571_v30 = vpack.c.bf16 %v569_v27, %v568_v26 }
 0x1a0   : > { %v570_v31 = vpack.c.bf16 %v567_v29, %v566_v28 }
 0x1a1   : > { %576 = vrot.lane.b32.xlu1 %v571_v30, %s923_s12 }
 0x1a2   : > { %574 = vrot.lane.b32.xlu0 %v570_v31, %s923_s12  ;;  %822 = vmatprep.subr.bf16.mxu0 %v570_v31  ;;  %s298_s12 = scalar_lea.vmem %s1101_s7, %s789_s9 }
 0x1a3   : > { %823 = vmatpush3.bf16.msra.mxu0 %v570_v31 }
 0x1a4   : > { %824 = vmatprep.subr.bf16.mxu0 %v571_v30 }
 0x1a5   : > { %582 = vrot.lane.b32.xlu1 %v571_v30, %s921_s11 }
 0x1a6   : > { %580 = vrot.lane.b32.xlu0 %v570_v31, %s921_s11 }
 0x1a7   : > { %825 = vmatpush3.bf16.msra.mxu0 %v571_v30 }
 0x1a9   : > { %318 = vperm.xlu1 %877, %v308_v33  }
 0x1aa   : > { %313 = vperm.xlu0 %878, %v307_v38  }
 0x1ad   : > { %328 = vperm.xlu1 %877, %v310_v39  }
 0x1ae   : > { %323 = vperm.xlu0 %878, %v309_v40  }
 0x1b1   : > { %601 = vperm.xlu1 %877, %v591_v41  }
 0x1b2   : > { %596 = vperm.xlu0 %878, %v590_v42  }
 0x1b5   : > { %611 = vperm.xlu1 %877, %v593_v43  }
 0x1b6   : > { %606 = vperm.xlu0 %878, %v592_v44  }
 0x213   : > { %v577_v46 = vpop.permute.xlu1 %576 }
 0x214   : > { %v575_v45 = vpop.permute.xlu0 %574 }
 0x215   : > { %826 = vmatprep.subr.bf16.mxu0 %v575_v45 }
 0x216   : > { %827 = vmatpush3.bf16.msra.mxu0 %v575_v45 }
 0x217   : > { %828 = vmatprep.subr.bf16.mxu0 %v577_v46  ;;  %v583_v48 = vpop.permute.xlu1 %582 }
 0x218   : > { %v581_v47 = vpop.permute.xlu0 %580 }
 0x21a   : > { %829 = vmatpush3.bf16.msra.mxu0 %v577_v46 }
 0x21b   : > { %830 = vmatprep.subr.bf16.mxu0 %v581_v47 }
 0x21e   : > { %831 = vmatpush3.bf16.msra.mxu0 %v581_v47 }
 0x21f   : > { %832 = vmatprep.subr.bf16.mxu0 %v583_v48 }
 0x222   : > { %833 = vmatpush3.bf16.msra.mxu0 %v583_v48 }
 0x225   : > { %835 = vmatmul.mubr.msk.bf16.vlgmr.msra.gmra.mrb[0].mxu0 %vm624_vm5, %v884_v49 }
 0x228   : > { %v319_v51 = vpop.permute.xlu1 %318 }
 0x229   : > { %v314_v50 = vpop.permute.xlu0 %313  ;;  %v390_v62 = vadd.f32 %v1023_v37, %v319_v51 }
 0x22a   : > { %v387_v58 = vadd.f32 %v1019_v35, %v314_v50 }
 0x22c   : > { %v329_v53 = vpop.permute.xlu1 %328 }
 0x22d   : > { %v324_v52 = vpop.permute.xlu0 %323  ;;  %v398_v60 = vadd.f32 %v1021_v36, %v329_v53 }
 0x22e   : > { %v395_v57 = vadd.f32 %v1017_v34, %v324_v52 }
 0x230   : > { %v602_v55 = vpop.permute.xlu1 %601 }
 0x231   : > { %v597_v54 = vpop.permute.xlu0 %596  ;;  %v848_v4 = vadd.f32 %v602_v55, %v390_v62 }
 0x232   : > { %v842_v63 = vadd.f32 %v597_v54, %v387_v58 }
 0x234   : > { %v612_v59 = vpop.permute.xlu1 %611 }
 0x235   : > { %v607_v56 = vpop.permute.xlu0 %606  ;;  %v845_v1 = vadd.f32 %v612_v59, %v398_v60 }
 0x236   : > { %v839_v61 = vadd.f32 %v607_v56, %v395_v57 }
 0x2f8   : > { %v836_v0 = vpop.f32.mrb[0].mxu0 }
 0x2f9   : > { %v840_v2 = vadd.f32 %v839_v61, %v836_v0  ;;  %v665_v3 = vpop.f32.mrb[1].mxu0 }
 0x2fa   : > { %v843_v34 = vadd.f32 %v842_v63, %v665_v3  ;;  %v837_v5 = vpop.f32.mrb[2].mxu0 }
 0x2fb   : > { %686 = vst.msk [vmem:[%s298_s12 + $0x10] sm:$0xff] %vm345_vm0, %v840_v2  ;;  %v846_v35 = vadd.f32 %v845_v1, %v837_v5  ;;  %v668_v6 = vpop.f32.mrb[3].mxu0 }
 0x2fc   : > { %684 = vst.msk [vmem:[%s298_s12] sm:$0xff] %vm345_vm0, %v843_v34  ;;  %v849_v36 = vadd.f32 %v848_v4, %v668_v6 }
 0x2fd   : > { %687 = vst.msk [vmem:[%s298_s12 + $0x18] sm:$0xff] %vm345_vm0, %v846_v35 }
 0x2fe   : > { %685 = vst.msk [vmem:[%s298_s12 + $0x8] sm:$0xff] %vm345_vm0, %v849_v36 }
 0x2ff PF: > { %s17_s26 = sadd.s32 1, %s919_s26   ;;  %s1104_s24 = smov %s915_s25 }
 0x300   : > { %p14_p5 = scmp.ge.s32.totalorder %s17_s26, 4   ;;  %s1105_s25 = smov %s1107_s27 }
 0x302   :  { %16 = sbr.rel (!%p14_p5) target bundleno = 2 (0x2), region = 78 }

</bundles_post_ra>
